<compile_context>
chip_gen: v6e
topology: v6e:2x2x1
jax: 0.10.0
libtpu: 0.0.40
codegen_flags: <defaults>
</compile_context>

<pallas_src>
import functools
import math

import jax
import jax.numpy as jnp
from jax.experimental import pallas as pl
from jax.experimental.pallas import tpu as pltpu  # noqa: F401  (TPU backend)

# ------------------------------ hyper-parameters ------------------------------
N_HEAD = 4
D_MODEL = 32
D_K = 8
D_V = 8
D_LATENT = 16
BATCH = 2
LEN_Q = 8
LEN_K = 8
LN_EPS_OUT = 1e-6   # MultiHeadAttention.layer_norm (eps=1e-6)
LN_EPS_EMB = 1e-5   # ScaledStylizationBlock.emb_norm (PyTorch default eps)


# ---------------------------------- helpers -----------------------------------
def _layernorm(x, gamma, beta, eps):
    mu = jnp.mean(x, axis=-1, keepdims=True)
    var = jnp.mean((x - mu) ** 2, axis=-1, keepdims=True)
    return (x - mu) * jax.lax.rsqrt(var + eps) * gamma + beta


def _silu(x):
    return x * jax.nn.sigmoid(x)


# ----------------------------------- kernel -----------------------------------
def _mha_style_kernel(q_ref, k_ref, v_ref, lat_ref,
                      wq_ref, bq_ref, wk_ref, bk_ref, wv_ref, bv_ref,
                      fc_w_ref, fc_b_ref,
                      lat_w_ref, lat_b_ref,
                      embn_g_ref, embn_b_ref,
                      out_w_ref, out_b_ref,
                      ln_g_ref, ln_b_ref,
                      o_ref, attn_ref,
                      *, b_sz, len_q, len_k, n_head, d_k, d_v, d_model):
    scale = 1.0 / math.sqrt(d_k)

    xq = q_ref[...]                     # [B*Lq, D]   (also the residual)
    xk = k_ref[...]                     # [B*Lk, D]
    xv = v_ref[...]                     # [B*Lk, D]

    # Fused Q/K/V projections over the whole flattened batch (one MXU pass each).
    q_p = jnp.dot(xq, wq_ref[...], preferred_element_type=jnp.float32) + bq_ref[...]
    k_p = jnp.dot(xk, wk_ref[...], preferred_element_type=jnp.float32) + bk_ref[...]
    v_p = jnp.dot(xv, wv_ref[...], preferred_element_type=jnp.float32) + bv_ref[...]

    # Per-(batch, head) scaled dot-product attention with static lane slices.
    per_batch_ctx = []
    for b in range(b_sz):
        qb = q_p[b * len_q:(b + 1) * len_q]      # [Lq, H*dk]
        kb = k_p[b * len_k:(b + 1) * len_k]      # [Lk, H*dk]
        vb = v_p[b * len_k:(b + 1) * len_k]      # [Lk, H*dv]
        head_ctx = []
        for h in range(n_head):
            qh = qb[:, h * d_k:(h + 1) * d_k]
            kh = kb[:, h * d_k:(h + 1) * d_k]
            vh = vb[:, h * d_v:(h + 1) * d_v]
            s = jax.lax.dot_general(
                qh, kh, (((1,), (1,)), ((), ())),
                preferred_element_type=jnp.float32) * scale          # [Lq, Lk]
            s = s - jnp.max(s, axis=-1, keepdims=True)
            p = jnp.exp(s)
            p = p * pl.reciprocal(jnp.sum(p, axis=-1, keepdims=True),
                                  approx=True)                       # softmax
            attn_ref[b * n_head + h] = p
            head_ctx.append(jnp.dot(p, vh, preferred_element_type=jnp.float32))
        per_batch_ctx.append(jnp.concatenate(head_ctx, axis=-1))     # [Lq, H*dv]
    ctx = jnp.concatenate(per_batch_ctx, axis=0)                     # [B*Lq, H*dv]

    # Output projection (dropout = identity in eval mode).
    fc_out = (jnp.dot(ctx, fc_w_ref[...], preferred_element_type=jnp.float32)
              + fc_b_ref[...])                                       # [B*Lq, D]

    # ScaledStylizationBlock: Linear(SiLU(latent)) -> (scale, shift),
    # then LayerNorm(emb) * (1 + scale) + shift -> SiLU -> Linear.
    lat = lat_ref[...]                                               # [B, d_latent]
    lat_out = (jnp.dot(_silu(lat), lat_w_ref[...],
                       preferred_element_type=jnp.float32) + lat_b_ref[...])  # [B, 2D]
    style_scale = lat_out[:, :d_model]                               # [B, D]
    style_shift = lat_out[:, d_model:]                               # [B, D]

    h_norm = _layernorm(fc_out, embn_g_ref[...], embn_b_ref[...], LN_EPS_EMB)
    mod_rows = []
    for b in range(b_sz):
        hb = h_norm[b * len_q:(b + 1) * len_q]
        mod_rows.append(hb * (1.0 + style_scale[b:b + 1, :]) + style_shift[b:b + 1, :])
    h_mod = jnp.concatenate(mod_rows, axis=0)                        # [B*Lq, D]

    styled = (jnp.dot(_silu(h_mod), out_w_ref[...],
                      preferred_element_type=jnp.float32) + out_b_ref[...])   # [B*Lq, D]

    # Residual add + final LayerNorm (eps = 1e-6).
    y = styled + xq
    o_ref[...] = _layernorm(y, ln_g_ref[...], ln_b_ref[...], LN_EPS_OUT)


# ---------------------------------- wrapper ------------------------------------
@jax.jit
def multi_head_attention_forward(params, q, k, v, latent):
    """
    q: [B, Lq, D], k/v: [B, Lk, D], latent: [B, 1, d_latent]
    returns: (out [B, Lq, D], attn [B, n_head, Lq, Lk])
    """
    b, lq, d = q.shape
    lk = k.shape[1]
    d_lat = latent.shape[-1]

    kern = functools.partial(
        _mha_style_kernel, b_sz=b, len_q=lq, len_k=lk,
        n_head=N_HEAD, d_k=D_K, d_v=D_V, d_model=d)

    out, attn = pl.pallas_call(
        kern,
        out_shape=(jax.ShapeDtypeStruct((b * lq, d), jnp.float32),
                   jax.ShapeDtypeStruct((b * N_HEAD, lq, lk), jnp.float32)),
    )(q.reshape(b * lq, d), k.reshape(b * lk, d), v.reshape(b * lk, d),
      latent.reshape(b, d_lat),
      params["w_qs"], params["b_qs"].reshape(1, -1),
      params["w_ks"], params["b_ks"].reshape(1, -1),
      params["w_vs"], params["b_vs"].reshape(1, -1),
      params["fc_w"], params["fc_b"].reshape(1, -1),
      params["lat_w"], params["lat_b"].reshape(1, -1),
      params["embn_g"].reshape(1, -1), params["embn_b"].reshape(1, -1),
      params["out_w"], params["out_b"].reshape(1, -1),
      params["ln_g"].reshape(1, -1), params["ln_b"].reshape(1, -1))
    return out.reshape(b, lq, d), attn.reshape(b, N_HEAD, lq, lk)


# -------------------------- pure-JAX reference (check) --------------------------
def reference_forward(params, q, k, v, latent):
    b, lq, _ = q.shape
    lk = k.shape[1]
    residual = q
    qp = (q @ params["w_qs"] + params["b_qs"]).reshape(b, lq, N_HEAD, D_K).transpose(0, 2, 1, 3)
    kp = (k @ params["w_ks"] + params["b_ks"]).reshape(b, lk, N_HEAD, D_K).transpose(0, 2, 1, 3)
    vp = (v @ params["w_vs"] + params["b_vs"]).reshape(b, lk, N_HEAD, D_V).transpose(0, 2, 1, 3)
    s = jnp.einsum("bhqd,bhkd->bhqk", qp, kp) / math.sqrt(D_K)
    attn = jax.nn.softmax(s, axis=-1)
    ctx = jnp.einsum("bhqk,bhkd->bhqd", attn, vp).transpose(0, 2, 1, 3).reshape(b, lq, N_HEAD * D_V)
    fc_out = ctx @ params["fc_w"] + params["fc_b"]

    lat_out = jax.nn.silu(latent) @ params["lat_w"] + params["lat_b"]     # [B,1,2D]
    scale_s, shift_s = jnp.split(lat_out, 2, axis=-1)

    def ln(x, g, bta, eps):
        mu = jnp.mean(x, -1, keepdims=True)
        var = jnp.mean((x - mu) ** 2, -1, keepdims=True)
        return (x - mu) / jnp.sqrt(var + eps) * g + bta

    h = ln(fc_out, params["embn_g"], params["embn_b"], LN_EPS_EMB) * (1.0 + scale_s) + shift_s
    styled = jax.nn.silu(h) @ params["out_w"] + params["out_b"]
    out = ln(styled + residual, params["ln_g"], params["ln_b"], LN_EPS_OUT)
    return out, attn


# ------------------------------------ main --------------------------------------
if __name__ == "__main__":
    key = jax.random.PRNGKey(0)
    ks = jax.random.split(key, 16)

    def nrm(kk, shape, sc=0.1):
        return jax.random.normal(kk, shape, dtype=jnp.float32) * sc

    params = dict(
        w_qs=nrm(ks[0], (D_MODEL, N_HEAD * D_K)),
        b_qs=nrm(ks[1], (N_HEAD * D_K,)),
        w_ks=nrm(ks[2], (D_MODEL, N_HEAD * D_K)),
        b_ks=nrm(ks[3], (N_HEAD * D_K,)),
        w_vs=nrm(ks[4], (D_MODEL, N_HEAD * D_V)),
        b_vs=nrm(ks[5], (N_HEAD * D_V,)),
        fc_w=nrm(ks[6], (N_HEAD * D_V, D_MODEL)),
        fc_b=nrm(ks[7], (D_MODEL,)),
        lat_w=nrm(ks[8], (D_LATENT, 2 * D_MODEL)),
        lat_b=nrm(ks[9], (2 * D_MODEL,)),
        embn_g=jnp.ones((D_MODEL,), jnp.float32),
        embn_b=jnp.zeros((D_MODEL,), jnp.float32),
        out_w=nrm(ks[10], (D_MODEL, D_MODEL)),
        out_b=nrm(ks[11], (D_MODEL,)),
        ln_g=jnp.ones((D_MODEL,), jnp.float32),
        ln_b=jnp.zeros((D_MODEL,), jnp.float32),
    )

    q = jax.random.normal(ks[12], (BATCH, LEN_Q, D_MODEL), dtype=jnp.float32)
    k = jax.random.normal(ks[13], (BATCH, LEN_K, D_MODEL), dtype=jnp.float32)
    v = jax.random.normal(ks[14], (BATCH, LEN_K, D_MODEL), dtype=jnp.float32)
    latent = jax.random.normal(ks[15], (BATCH, 1, D_LATENT), dtype=jnp.float32)

    out, attn = multi_head_attention_forward(params, q, k, v, latent)
    out, attn = jax.block_until_ready((out, attn))

    ref_out, ref_attn = reference_forward(params, q, k, v, latent)

    assert out.shape == (BATCH, LEN_Q, D_MODEL), out.shape
    assert attn.shape == (BATCH, N_HEAD, LEN_Q, LEN_K), attn.shape
    assert bool(jnp.all(jnp.isfinite(out))) and bool(jnp.all(jnp.isfinite(attn)))
    assert float(jnp.max(jnp.abs(out - ref_out))) < 2e-2
    assert float(jnp.max(jnp.abs(attn - ref_attn))) < 2e-2
    print("KERNEL_OK")
</pallas_src>

<mosaic_0001>
module attributes {stable_mosaic.version = 11 : i64} {
  func.func @_mha_style_kernel(%arg0: memref<16x32xf32, #tpu.memory_space<vmem>>, %arg1: memref<16x32xf32, #tpu.memory_space<vmem>>, %arg2: memref<16x32xf32, #tpu.memory_space<vmem>>, %arg3: memref<2x16xf32, #tpu.memory_space<vmem>>, %arg4: memref<32x32xf32, #tpu.memory_space<vmem>>, %arg5: memref<1x32xf32, #tpu.memory_space<vmem>>, %arg6: memref<32x32xf32, #tpu.memory_space<vmem>>, %arg7: memref<1x32xf32, #tpu.memory_space<vmem>>, %arg8: memref<32x32xf32, #tpu.memory_space<vmem>>, %arg9: memref<1x32xf32, #tpu.memory_space<vmem>>, %arg10: memref<32x32xf32, #tpu.memory_space<vmem>>, %arg11: memref<1x32xf32, #tpu.memory_space<vmem>>, %arg12: memref<16x64xf32, #tpu.memory_space<vmem>>, %arg13: memref<1x64xf32, #tpu.memory_space<vmem>>, %arg14: memref<1x32xf32, #tpu.memory_space<vmem>>, %arg15: memref<1x32xf32, #tpu.memory_space<vmem>>, %arg16: memref<32x32xf32, #tpu.memory_space<vmem>>, %arg17: memref<1x32xf32, #tpu.memory_space<vmem>>, %arg18: memref<1x32xf32, #tpu.memory_space<vmem>>, %arg19: memref<1x32xf32, #tpu.memory_space<vmem>>, %arg20: memref<16x32xf32, #tpu.memory_space<vmem>>, %arg21: memref<8x8x8xf32, #tpu.memory_space<vmem>>) attributes {dimension_semantics = [], scalar_prefetch = 0 : i64, scratch_operands = 0 : i64, tpu.core_type = #tpu.core_type<tc>} {
    %c0 = arith.constant 0 : index
    %c0_0 = arith.constant 0 : index
    %0 = vector.load %arg0[%c0, %c0_0] : memref<16x32xf32, #tpu.memory_space<vmem>>, vector<16x32xf32>
    %c0_1 = arith.constant 0 : index
    %c0_2 = arith.constant 0 : index
    %1 = vector.load %arg1[%c0_1, %c0_2] : memref<16x32xf32, #tpu.memory_space<vmem>>, vector<16x32xf32>
    %c0_3 = arith.constant 0 : index
    %c0_4 = arith.constant 0 : index
    %2 = vector.load %arg2[%c0_3, %c0_4] : memref<16x32xf32, #tpu.memory_space<vmem>>, vector<16x32xf32>
    %c0_5 = arith.constant 0 : index
    %c0_6 = arith.constant 0 : index
    %3 = vector.load %arg4[%c0_5, %c0_6] : memref<32x32xf32, #tpu.memory_space<vmem>>, vector<32x32xf32>
    %cst = arith.constant dense<0.000000e+00> : vector<16x32xf32>
    %4 = tpu.matmul %0, %3, %cst {dimension_numbers = #tpu.dot_dimension_numbers<[1], [0], [0], [1], [0, 0, 1, 1], [], []>} : vector<16x32xf32>, vector<32x32xf32>, vector<16x32xf32> -> vector<16x32xf32>
    %c0_7 = arith.constant 0 : index
    %c0_8 = arith.constant 0 : index
    %5 = vector.load %arg5[%c0_7, %c0_8] : memref<1x32xf32, #tpu.memory_space<vmem>>, vector<1x32xf32>
    %6 = vector.broadcast %5 : vector<1x32xf32> to vector<16x32xf32>
    %7 = arith.addf %4, %6 : vector<16x32xf32>
    %c0_9 = arith.constant 0 : index
    %c0_10 = arith.constant 0 : index
    %8 = vector.load %arg6[%c0_9, %c0_10] : memref<32x32xf32, #tpu.memory_space<vmem>>, vector<32x32xf32>
    %cst_11 = arith.constant dense<0.000000e+00> : vector<16x32xf32>
    %9 = tpu.matmul %1, %8, %cst_11 {dimension_numbers = #tpu.dot_dimension_numbers<[1], [0], [0], [1], [0, 0, 1, 1], [], []>} : vector<16x32xf32>, vector<32x32xf32>, vector<16x32xf32> -> vector<16x32xf32>
    %c0_12 = arith.constant 0 : index
    %c0_13 = arith.constant 0 : index
    %10 = vector.load %arg7[%c0_12, %c0_13] : memref<1x32xf32, #tpu.memory_space<vmem>>, vector<1x32xf32>
    %11 = vector.broadcast %10 : vector<1x32xf32> to vector<16x32xf32>
    %12 = arith.addf %9, %11 : vector<16x32xf32>
    %c0_14 = arith.constant 0 : index
    %c0_15 = arith.constant 0 : index
    %13 = vector.load %arg8[%c0_14, %c0_15] : memref<32x32xf32, #tpu.memory_space<vmem>>, vector<32x32xf32>
    %cst_16 = arith.constant dense<0.000000e+00> : vector<16x32xf32>
    %14 = tpu.matmul %2, %13, %cst_16 {dimension_numbers = #tpu.dot_dimension_numbers<[1], [0], [0], [1], [0, 0, 1, 1], [], []>} : vector<16x32xf32>, vector<32x32xf32>, vector<16x32xf32> -> vector<16x32xf32>
    %c0_17 = arith.constant 0 : index
    %c0_18 = arith.constant 0 : index
    %15 = vector.load %arg9[%c0_17, %c0_18] : memref<1x32xf32, #tpu.memory_space<vmem>>, vector<1x32xf32>
    %16 = vector.broadcast %15 : vector<1x32xf32> to vector<16x32xf32>
    %17 = arith.addf %14, %16 : vector<16x32xf32>
    %18 = vector.extract_strided_slice %7 {offsets = [0, 0], sizes = [8, 32], strides = [1, 1]} : vector<16x32xf32> to vector<8x32xf32>
    %19 = vector.extract_strided_slice %12 {offsets = [0, 0], sizes = [8, 32], strides = [1, 1]} : vector<16x32xf32> to vector<8x32xf32>
    %20 = vector.extract_strided_slice %17 {offsets = [0, 0], sizes = [8, 32], strides = [1, 1]} : vector<16x32xf32> to vector<8x32xf32>
    %21 = vector.extract_strided_slice %18 {offsets = [0, 0], sizes = [8, 8], strides = [1, 1]} : vector<8x32xf32> to vector<8x8xf32>
    %22 = vector.extract_strided_slice %19 {offsets = [0, 0], sizes = [8, 8], strides = [1, 1]} : vector<8x32xf32> to vector<8x8xf32>
    %23 = vector.extract_strided_slice %20 {offsets = [0, 0], sizes = [8, 8], strides = [1, 1]} : vector<8x32xf32> to vector<8x8xf32>
    %cst_19 = arith.constant dense<0.000000e+00> : vector<8x8xf32>
    %24 = tpu.matmul %21, %22, %cst_19 {dimension_numbers = #tpu.dot_dimension_numbers<[1], [1], [0], [0], [0, 0, 1, 0], [], []>} : vector<8x8xf32>, vector<8x8xf32>, vector<8x8xf32> -> vector<8x8xf32>
    %cst_20 = arith.constant 0.353553385 : f32
    %25 = vector.broadcast %cst_20 : f32 to vector<8x8xf32>
    %26 = arith.mulf %24, %25 : vector<8x8xf32>
    %cst_21 = arith.constant dense<0xFF800000> : vector<8xf32>
    %27 = vector.multi_reduction <maximumf>, %26, %cst_21 [1] : vector<8x8xf32> to vector<8xf32>
    %28 = vector.shape_cast %27 : vector<8xf32> to vector<8x1xf32>
    %29 = vector.broadcast %28 : vector<8x1xf32> to vector<8x8xf32>
    %30 = arith.subf %26, %29 : vector<8x8xf32>
    %31 = math.exp %30 : vector<8x8xf32>
    %cst_22 = arith.constant dense<0.000000e+00> : vector<8xf32>
    %32 = vector.multi_reduction <add>, %31, %cst_22 [1] : vector<8x8xf32> to vector<8xf32>
    %33 = vector.shape_cast %32 : vector<8xf32> to vector<8x1xf32>
    %34 = tpu.reciprocal %33 {approx = true} : vector<8x1xf32> -> vector<8x1xf32>
    %35 = vector.broadcast %34 : vector<8x1xf32> to vector<8x8xf32>
    %36 = arith.mulf %31, %35 : vector<8x8xf32>
    %c0_23 = arith.constant 0 : index
    %c0_24 = arith.constant 0 : index
    %c0_25 = arith.constant 0 : index
    %37 = vector.load %arg21[%c0_23, %c0_24, %c0_25] : memref<8x8x8xf32, #tpu.memory_space<vmem>>, vector<1x8x8xf32>
    %38 = vector.shape_cast %37 : vector<1x8x8xf32> to vector<8x8xf32>
    %39 = vector.shape_cast %36 : vector<8x8xf32> to vector<1x8x8xf32>
    tpu.vector_store %arg21[%c0_23, %c0_24, %c0_25], %39 {strides = array<i32>} : memref<8x8x8xf32, #tpu.memory_space<vmem>>, vector<1x8x8xf32>,
    %cst_26 = arith.constant dense<0.000000e+00> : vector<8x8xf32>
    %40 = tpu.matmul %36, %23, %cst_26 {dimension_numbers = #tpu.dot_dimension_numbers<[1], [0], [0], [1], [0, 0, 1, 1], [], []>} : vector<8x8xf32>, vector<8x8xf32>, vector<8x8xf32> -> vector<8x8xf32>
    %41 = vector.extract_strided_slice %18 {offsets = [0, 8], sizes = [8, 8], strides = [1, 1]} : vector<8x32xf32> to vector<8x8xf32>
    %42 = vector.extract_strided_slice %19 {offsets = [0, 8], sizes = [8, 8], strides = [1, 1]} : vector<8x32xf32> to vector<8x8xf32>
    %43 = vector.extract_strided_slice %20 {offsets = [0, 8], sizes = [8, 8], strides = [1, 1]} : vector<8x32xf32> to vector<8x8xf32>
    %cst_27 = arith.constant dense<0.000000e+00> : vector<8x8xf32>
    %44 = tpu.matmul %41, %42, %cst_27 {dimension_numbers = #tpu.dot_dimension_numbers<[1], [1], [0], [0], [0, 0, 1, 0], [], []>} : vector<8x8xf32>, vector<8x8xf32>, vector<8x8xf32> -> vector<8x8xf32>
    %cst_28 = arith.constant 0.353553385 : f32
    %45 = vector.broadcast %cst_28 : f32 to vector<8x8xf32>
    %46 = arith.mulf %44, %45 : vector<8x8xf32>
    %cst_29 = arith.constant dense<0xFF800000> : vector<8xf32>
    %47 = vector.multi_reduction <maximumf>, %46, %cst_29 [1] : vector<8x8xf32> to vector<8xf32>
    %48 = vector.shape_cast %47 : vector<8xf32> to vector<8x1xf32>
    %49 = vector.broadcast %48 : vector<8x1xf32> to vector<8x8xf32>
    %50 = arith.subf %46, %49 : vector<8x8xf32>
    %51 = math.exp %50 : vector<8x8xf32>
    %cst_30 = arith.constant dense<0.000000e+00> : vector<8xf32>
    %52 = vector.multi_reduction <add>, %51, %cst_30 [1] : vector<8x8xf32> to vector<8xf32>
    %53 = vector.shape_cast %52 : vector<8xf32> to vector<8x1xf32>
    %54 = tpu.reciprocal %53 {approx = true} : vector<8x1xf32> -> vector<8x1xf32>
    %55 = vector.broadcast %54 : vector<8x1xf32> to vector<8x8xf32>
    %56 = arith.mulf %51, %55 : vector<8x8xf32>
    %c1 = arith.constant 1 : index
    %c0_31 = arith.constant 0 : index
    %c0_32 = arith.constant 0 : index
    %57 = vector.load %arg21[%c1, %c0_31, %c0_32] : memref<8x8x8xf32, #tpu.memory_space<vmem>>, vector<1x8x8xf32>
    %58 = vector.shape_cast %57 : vector<1x8x8xf32> to vector<8x8xf32>
    %59 = vector.shape_cast %56 : vector<8x8xf32> to vector<1x8x8xf32>
    tpu.vector_store %arg21[%c1, %c0_31, %c0_32], %59 {strides = array<i32>} : memref<8x8x8xf32, #tpu.memory_space<vmem>>, vector<1x8x8xf32>,
    %cst_33 = arith.constant dense<0.000000e+00> : vector<8x8xf32>
    %60 = tpu.matmul %56, %43, %cst_33 {dimension_numbers = #tpu.dot_dimension_numbers<[1], [0], [0], [1], [0, 0, 1, 1], [], []>} : vector<8x8xf32>, vector<8x8xf32>, vector<8x8xf32> -> vector<8x8xf32>
    %61 = vector.extract_strided_slice %18 {offsets = [0, 16], sizes = [8, 8], strides = [1, 1]} : vector<8x32xf32> to vector<8x8xf32>
    %62 = vector.extract_strided_slice %19 {offsets = [0, 16], sizes = [8, 8], strides = [1, 1]} : vector<8x32xf32> to vector<8x8xf32>
    %63 = vector.extract_strided_slice %20 {offsets = [0, 16], sizes = [8, 8], strides = [1, 1]} : vector<8x32xf32> to vector<8x8xf32>
    %cst_34 = arith.constant dense<0.000000e+00> : vector<8x8xf32>
    %64 = tpu.matmul %61, %62, %cst_34 {dimension_numbers = #tpu.dot_dimension_numbers<[1], [1], [0], [0], [0, 0, 1, 0], [], []>} : vector<8x8xf32>, vector<8x8xf32>, vector<8x8xf32> -> vector<8x8xf32>
    %cst_35 = arith.constant 0.353553385 : f32
    %65 = vector.broadcast %cst_35 : f32 to vector<8x8xf32>
    %66 = arith.mulf %64, %65 : vector<8x8xf32>
    %cst_36 = arith.constant dense<0xFF800000> : vector<8xf32>
    %67 = vector.multi_reduction <maximumf>, %66, %cst_36 [1] : vector<8x8xf32> to vector<8xf32>
    %68 = vector.shape_cast %67 : vector<8xf32> to vector<8x1xf32>
    %69 = vector.broadcast %68 : vector<8x1xf32> to vector<8x8xf32>
    %70 = arith.subf %66, %69 : vector<8x8xf32>
    %71 = math.exp %70 : vector<8x8xf32>
    %cst_37 = arith.constant dense<0.000000e+00> : vector<8xf32>
    %72 = vector.multi_reduction <add>, %71, %cst_37 [1] : vector<8x8xf32> to vector<8xf32>
    %73 = vector.shape_cast %72 : vector<8xf32> to vector<8x1xf32>
    %74 = tpu.reciprocal %73 {approx = true} : vector<8x1xf32> -> vector<8x1xf32>
    %75 = vector.broadcast %74 : vector<8x1xf32> to vector<8x8xf32>
    %76 = arith.mulf %71, %75 : vector<8x8xf32>
    %c2 = arith.constant 2 : index
    %c0_38 = arith.constant 0 : index
    %c0_39 = arith.constant 0 : index
    %77 = vector.load %arg21[%c2, %c0_38, %c0_39] : memref<8x8x8xf32, #tpu.memory_space<vmem>>, vector<1x8x8xf32>
    %78 = vector.shape_cast %77 : vector<1x8x8xf32> to vector<8x8xf32>
    %79 = vector.shape_cast %76 : vector<8x8xf32> to vector<1x8x8xf32>
    tpu.vector_store %arg21[%c2, %c0_38, %c0_39], %79 {strides = array<i32>} : memref<8x8x8xf32, #tpu.memory_space<vmem>>, vector<1x8x8xf32>,
    %cst_40 = arith.constant dense<0.000000e+00> : vector<8x8xf32>
    %80 = tpu.matmul %76, %63, %cst_40 {dimension_numbers = #tpu.dot_dimension_numbers<[1], [0], [0], [1], [0, 0, 1, 1], [], []>} : vector<8x8xf32>, vector<8x8xf32>, vector<8x8xf32> -> vector<8x8xf32>
    %81 = vector.extract_strided_slice %18 {offsets = [0, 24], sizes = [8, 8], strides = [1, 1]} : vector<8x32xf32> to vector<8x8xf32>
    %82 = vector.extract_strided_slice %19 {offsets = [0, 24], sizes = [8, 8], strides = [1, 1]} : vector<8x32xf32> to vector<8x8xf32>
    %83 = vector.extract_strided_slice %20 {offsets = [0, 24], sizes = [8, 8], strides = [1, 1]} : vector<8x32xf32> to vector<8x8xf32>
    %cst_41 = arith.constant dense<0.000000e+00> : vector<8x8xf32>
    %84 = tpu.matmul %81, %82, %cst_41 {dimension_numbers = #tpu.dot_dimension_numbers<[1], [1], [0], [0], [0, 0, 1, 0], [], []>} : vector<8x8xf32>, vector<8x8xf32>, vector<8x8xf32> -> vector<8x8xf32>
    %cst_42 = arith.constant 0.353553385 : f32
    %85 = vector.broadcast %cst_42 : f32 to vector<8x8xf32>
    %86 = arith.mulf %84, %85 : vector<8x8xf32>
    %cst_43 = arith.constant dense<0xFF800000> : vector<8xf32>
    %87 = vector.multi_reduction <maximumf>, %86, %cst_43 [1] : vector<8x8xf32> to vector<8xf32>
    %88 = vector.shape_cast %87 : vector<8xf32> to vector<8x1xf32>
    %89 = vector.broadcast %88 : vector<8x1xf32> to vector<8x8xf32>
    %90 = arith.subf %86, %89 : vector<8x8xf32>
    %91 = math.exp %90 : vector<8x8xf32>
    %cst_44 = arith.constant dense<0.000000e+00> : vector<8xf32>
    %92 = vector.multi_reduction <add>, %91, %cst_44 [1] : vector<8x8xf32> to vector<8xf32>
    %93 = vector.shape_cast %92 : vector<8xf32> to vector<8x1xf32>
    %94 = tpu.reciprocal %93 {approx = true} : vector<8x1xf32> -> vector<8x1xf32>
    %95 = vector.broadcast %94 : vector<8x1xf32> to vector<8x8xf32>
    %96 = arith.mulf %91, %95 : vector<8x8xf32>
    %c3 = arith.constant 3 : index
    %c0_45 = arith.constant 0 : index
    %c0_46 = arith.constant 0 : index
    %97 = vector.load %arg21[%c3, %c0_45, %c0_46] : memref<8x8x8xf32, #tpu.memory_space<vmem>>, vector<1x8x8xf32>
    %98 = vector.shape_cast %97 : vector<1x8x8xf32> to vector<8x8xf32>
    %99 = vector.shape_cast %96 : vector<8x8xf32> to vector<1x8x8xf32>
    tpu.vector_store %arg21[%c3, %c0_45, %c0_46], %99 {strides = array<i32>} : memref<8x8x8xf32, #tpu.memory_space<vmem>>, vector<1x8x8xf32>,
    %cst_47 = arith.constant dense<0.000000e+00> : vector<8x8xf32>
    %100 = tpu.matmul %96, %83, %cst_47 {dimension_numbers = #tpu.dot_dimension_numbers<[1], [0], [0], [1], [0, 0, 1, 1], [], []>} : vector<8x8xf32>, vector<8x8xf32>, vector<8x8xf32> -> vector<8x8xf32>
    %101 = tpu.concatenate %40, %60, %80, %100 in 1 : vector<8x8xf32>, vector<8x8xf32>, vector<8x8xf32>, vector<8x8xf32> -> vector<8x32xf32>
    %102 = vector.extract_strided_slice %7 {offsets = [8, 0], sizes = [8, 32], strides = [1, 1]} : vector<16x32xf32> to vector<8x32xf32>
    %103 = vector.extract_strided_slice %12 {offsets = [8, 0], sizes = [8, 32], strides = [1, 1]} : vector<16x32xf32> to vector<8x32xf32>
    %104 = vector.extract_strided_slice %17 {offsets = [8, 0], sizes = [8, 32], strides = [1, 1]} : vector<16x32xf32> to vector<8x32xf32>
    %105 = vector.extract_strided_slice %102 {offsets = [0, 0], sizes = [8, 8], strides = [1, 1]} : vector<8x32xf32> to vector<8x8xf32>
    %106 = vector.extract_strided_slice %103 {offsets = [0, 0], sizes = [8, 8], strides = [1, 1]} : vector<8x32xf32> to vector<8x8xf32>
    %107 = vector.extract_strided_slice %104 {offsets = [0, 0], sizes = [8, 8], strides = [1, 1]} : vector<8x32xf32> to vector<8x8xf32>
    %cst_48 = arith.constant dense<0.000000e+00> : vector<8x8xf32>
    %108 = tpu.matmul %105, %106, %cst_48 {dimension_numbers = #tpu.dot_dimension_numbers<[1], [1], [0], [0], [0, 0, 1, 0], [], []>} : vector<8x8xf32>, vector<8x8xf32>, vector<8x8xf32> -> vector<8x8xf32>
    %cst_49 = arith.constant 0.353553385 : f32
    %109 = vector.broadcast %cst_49 : f32 to vector<8x8xf32>
    %110 = arith.mulf %108, %109 : vector<8x8xf32>
    %cst_50 = arith.constant dense<0xFF800000> : vector<8xf32>
    %111 = vector.multi_reduction <maximumf>, %110, %cst_50 [1] : vector<8x8xf32> to vector<8xf32>
    %112 = vector.shape_cast %111 : vector<8xf32> to vector<8x1xf32>
    %113 = vector.broadcast %112 : vector<8x1xf32> to vector<8x8xf32>
    %114 = arith.subf %110, %113 : vector<8x8xf32>
    %115 = math.exp %114 : vector<8x8xf32>
    %cst_51 = arith.constant dense<0.000000e+00> : vector<8xf32>
    %116 = vector.multi_reduction <add>, %115, %cst_51 [1] : vector<8x8xf32> to vector<8xf32>
    %117 = vector.shape_cast %116 : vector<8xf32> to vector<8x1xf32>
    %118 = tpu.reciprocal %117 {approx = true} : vector<8x1xf32> -> vector<8x1xf32>
    %119 = vector.broadcast %118 : vector<8x1xf32> to vector<8x8xf32>
    %120 = arith.mulf %115, %119 : vector<8x8xf32>
    %c4 = arith.constant 4 : index
    %c0_52 = arith.constant 0 : index
    %c0_53 = arith.constant 0 : index
    %121 = vector.load %arg21[%c4, %c0_52, %c0_53] : memref<8x8x8xf32, #tpu.memory_space<vmem>>, vector<1x8x8xf32>
    %122 = vector.shape_cast %121 : vector<1x8x8xf32> to vector<8x8xf32>
    %123 = vector.shape_cast %120 : vector<8x8xf32> to vector<1x8x8xf32>
    tpu.vector_store %arg21[%c4, %c0_52, %c0_53], %123 {strides = array<i32>} : memref<8x8x8xf32, #tpu.memory_space<vmem>>, vector<1x8x8xf32>,
    %cst_54 = arith.constant dense<0.000000e+00> : vector<8x8xf32>
    %124 = tpu.matmul %120, %107, %cst_54 {dimension_numbers = #tpu.dot_dimension_numbers<[1], [0], [0], [1], [0, 0, 1, 1], [], []>} : vector<8x8xf32>, vector<8x8xf32>, vector<8x8xf32> -> vector<8x8xf32>
    %125 = vector.extract_strided_slice %102 {offsets = [0, 8], sizes = [8, 8], strides = [1, 1]} : vector<8x32xf32> to vector<8x8xf32>
    %126 = vector.extract_strided_slice %103 {offsets = [0, 8], sizes = [8, 8], strides = [1, 1]} : vector<8x32xf32> to vector<8x8xf32>
    %127 = vector.extract_strided_slice %104 {offsets = [0, 8], sizes = [8, 8], strides = [1, 1]} : vector<8x32xf32> to vector<8x8xf32>
    %cst_55 = arith.constant dense<0.000000e+00> : vector<8x8xf32>
    %128 = tpu.matmul %125, %126, %cst_55 {dimension_numbers = #tpu.dot_dimension_numbers<[1], [1], [0], [0], [0, 0, 1, 0], [], []>} : vector<8x8xf32>, vector<8x8xf32>, vector<8x8xf32> -> vector<8x8xf32>
    %cst_56 = arith.constant 0.353553385 : f32
    %129 = vector.broadcast %cst_56 : f32 to vector<8x8xf32>
    %130 = arith.mulf %128, %129 : vector<8x8xf32>
    %cst_57 = arith.constant dense<0xFF800000> : vector<8xf32>
    %131 = vector.multi_reduction <maximumf>, %130, %cst_57 [1] : vector<8x8xf32> to vector<8xf32>
    %132 = vector.shape_cast %131 : vector<8xf32> to vector<8x1xf32>
    %133 = vector.broadcast %132 : vector<8x1xf32> to vector<8x8xf32>
    %134 = arith.subf %130, %133 : vector<8x8xf32>
    %135 = math.exp %134 : vector<8x8xf32>
    %cst_58 = arith.constant dense<0.000000e+00> : vector<8xf32>
    %136 = vector.multi_reduction <add>, %135, %cst_58 [1] : vector<8x8xf32> to vector<8xf32>
    %137 = vector.shape_cast %136 : vector<8xf32> to vector<8x1xf32>
    %138 = tpu.reciprocal %137 {approx = true} : vector<8x1xf32> -> vector<8x1xf32>
    %139 = vector.broadcast %138 : vector<8x1xf32> to vector<8x8xf32>
    %140 = arith.mulf %135, %139 : vector<8x8xf32>
    %c5 = arith.constant 5 : index
    %c0_59 = arith.constant 0 : index
    %c0_60 = arith.constant 0 : index
    %141 = vector.load %arg21[%c5, %c0_59, %c0_60] : memref<8x8x8xf32, #tpu.memory_space<vmem>>, vector<1x8x8xf32>
    %142 = vector.shape_cast %141 : vector<1x8x8xf32> to vector<8x8xf32>
    %143 = vector.shape_cast %140 : vector<8x8xf32> to vector<1x8x8xf32>
    tpu.vector_store %arg21[%c5, %c0_59, %c0_60], %143 {strides = array<i32>} : memref<8x8x8xf32, #tpu.memory_space<vmem>>, vector<1x8x8xf32>,
    %cst_61 = arith.constant dense<0.000000e+00> : vector<8x8xf32>
    %144 = tpu.matmul %140, %127, %cst_61 {dimension_numbers = #tpu.dot_dimension_numbers<[1], [0], [0], [1], [0, 0, 1, 1], [], []>} : vector<8x8xf32>, vector<8x8xf32>, vector<8x8xf32> -> vector<8x8xf32>
    %145 = vector.extract_strided_slice %102 {offsets = [0, 16], sizes = [8, 8], strides = [1, 1]} : vector<8x32xf32> to vector<8x8xf32>
    %146 = vector.extract_strided_slice %103 {offsets = [0, 16], sizes = [8, 8], strides = [1, 1]} : vector<8x32xf32> to vector<8x8xf32>
    %147 = vector.extract_strided_slice %104 {offsets = [0, 16], sizes = [8, 8], strides = [1, 1]} : vector<8x32xf32> to vector<8x8xf32>
    %cst_62 = arith.constant dense<0.000000e+00> : vector<8x8xf32>
    %148 = tpu.matmul %145, %146, %cst_62 {dimension_numbers = #tpu.dot_dimension_numbers<[1], [1], [0], [0], [0, 0, 1, 0], [], []>} : vector<8x8xf32>, vector<8x8xf32>, vector<8x8xf32> -> vector<8x8xf32>
    %cst_63 = arith.constant 0.353553385 : f32
    %149 = vector.broadcast %cst_63 : f32 to vector<8x8xf32>
    %150 = arith.mulf %148, %149 : vector<8x8xf32>
    %cst_64 = arith.constant dense<0xFF800000> : vector<8xf32>
    %151 = vector.multi_reduction <maximumf>, %150, %cst_64 [1] : vector<8x8xf32> to vector<8xf32>
    %152 = vector.shape_cast %151 : vector<8xf32> to vector<8x1xf32>
    %153 = vector.broadcast %152 : vector<8x1xf32> to vector<8x8xf32>
    %154 = arith.subf %150, %153 : vector<8x8xf32>
    %155 = math.exp %154 : vector<8x8xf32>
    %cst_65 = arith.constant dense<0.000000e+00> : vector<8xf32>
    %156 = vector.multi_reduction <add>, %155, %cst_65 [1] : vector<8x8xf32> to vector<8xf32>
    %157 = vector.shape_cast %156 : vector<8xf32> to vector<8x1xf32>
    %158 = tpu.reciprocal %157 {approx = true} : vector<8x1xf32> -> vector<8x1xf32>
    %159 = vector.broadcast %158 : vector<8x1xf32> to vector<8x8xf32>
    %160 = arith.mulf %155, %159 : vector<8x8xf32>
    %c6 = arith.constant 6 : index
    %c0_66 = arith.constant 0 : index
    %c0_67 = arith.constant 0 : index
    %161 = vector.load %arg21[%c6, %c0_66, %c0_67] : memref<8x8x8xf32, #tpu.memory_space<vmem>>, vector<1x8x8xf32>
    %162 = vector.shape_cast %161 : vector<1x8x8xf32> to vector<8x8xf32>
    %163 = vector.shape_cast %160 : vector<8x8xf32> to vector<1x8x8xf32>
    tpu.vector_store %arg21[%c6, %c0_66, %c0_67], %163 {strides = array<i32>} : memref<8x8x8xf32, #tpu.memory_space<vmem>>, vector<1x8x8xf32>,
    %cst_68 = arith.constant dense<0.000000e+00> : vector<8x8xf32>
    %164 = tpu.matmul %160, %147, %cst_68 {dimension_numbers = #tpu.dot_dimension_numbers<[1], [0], [0], [1], [0, 0, 1, 1], [], []>} : vector<8x8xf32>, vector<8x8xf32>, vector<8x8xf32> -> vector<8x8xf32>
    %165 = vector.extract_strided_slice %102 {offsets = [0, 24], sizes = [8, 8], strides = [1, 1]} : vector<8x32xf32> to vector<8x8xf32>
    %166 = vector.extract_strided_slice %103 {offsets = [0, 24], sizes = [8, 8], strides = [1, 1]} : vector<8x32xf32> to vector<8x8xf32>
    %167 = vector.extract_strided_slice %104 {offsets = [0, 24], sizes = [8, 8], strides = [1, 1]} : vector<8x32xf32> to vector<8x8xf32>
    %cst_69 = arith.constant dense<0.000000e+00> : vector<8x8xf32>
    %168 = tpu.matmul %165, %166, %cst_69 {dimension_numbers = #tpu.dot_dimension_numbers<[1], [1], [0], [0], [0, 0, 1, 0], [], []>} : vector<8x8xf32>, vector<8x8xf32>, vector<8x8xf32> -> vector<8x8xf32>
    %cst_70 = arith.constant 0.353553385 : f32
    %169 = vector.broadcast %cst_70 : f32 to vector<8x8xf32>
    %170 = arith.mulf %168, %169 : vector<8x8xf32>
    %cst_71 = arith.constant dense<0xFF800000> : vector<8xf32>
    %171 = vector.multi_reduction <maximumf>, %170, %cst_71 [1] : vector<8x8xf32> to vector<8xf32>
    %172 = vector.shape_cast %171 : vector<8xf32> to vector<8x1xf32>
    %173 = vector.broadcast %172 : vector<8x1xf32> to vector<8x8xf32>
    %174 = arith.subf %170, %173 : vector<8x8xf32>
    %175 = math.exp %174 : vector<8x8xf32>
    %cst_72 = arith.constant dense<0.000000e+00> : vector<8xf32>
    %176 = vector.multi_reduction <add>, %175, %cst_72 [1] : vector<8x8xf32> to vector<8xf32>
    %177 = vector.shape_cast %176 : vector<8xf32> to vector<8x1xf32>
    %178 = tpu.reciprocal %177 {approx = true} : vector<8x1xf32> -> vector<8x1xf32>
    %179 = vector.broadcast %178 : vector<8x1xf32> to vector<8x8xf32>
    %180 = arith.mulf %175, %179 : vector<8x8xf32>
    %c7 = arith.constant 7 : index
    %c0_73 = arith.constant 0 : index
    %c0_74 = arith.constant 0 : index
    %181 = vector.load %arg21[%c7, %c0_73, %c0_74] : memref<8x8x8xf32, #tpu.memory_space<vmem>>, vector<1x8x8xf32>
    %182 = vector.shape_cast %181 : vector<1x8x8xf32> to vector<8x8xf32>
    %183 = vector.shape_cast %180 : vector<8x8xf32> to vector<1x8x8xf32>
    tpu.vector_store %arg21[%c7, %c0_73, %c0_74], %183 {strides = array<i32>} : memref<8x8x8xf32, #tpu.memory_space<vmem>>, vector<1x8x8xf32>,
    %cst_75 = arith.constant dense<0.000000e+00> : vector<8x8xf32>
    %184 = tpu.matmul %180, %167, %cst_75 {dimension_numbers = #tpu.dot_dimension_numbers<[1], [0], [0], [1], [0, 0, 1, 1], [], []>} : vector<8x8xf32>, vector<8x8xf32>, vector<8x8xf32> -> vector<8x8xf32>
    %185 = tpu.concatenate %124, %144, %164, %184 in 1 : vector<8x8xf32>, vector<8x8xf32>, vector<8x8xf32>, vector<8x8xf32> -> vector<8x32xf32>
    %186 = tpu.concatenate %101, %185 in 0 : vector<8x32xf32>, vector<8x32xf32> -> vector<16x32xf32>
    %c0_76 = arith.constant 0 : index
    %c0_77 = arith.constant 0 : index
    %187 = vector.load %arg10[%c0_76, %c0_77] : memref<32x32xf32, #tpu.memory_space<vmem>>, vector<32x32xf32>
    %cst_78 = arith.constant dense<0.000000e+00> : vector<16x32xf32>
    %188 = tpu.matmul %186, %187, %cst_78 {dimension_numbers = #tpu.dot_dimension_numbers<[1], [0], [0], [1], [0, 0, 1, 1], [], []>} : vector<16x32xf32>, vector<32x32xf32>, vector<16x32xf32> -> vector<16x32xf32>
    %c0_79 = arith.constant 0 : index
    %c0_80 = arith.constant 0 : index
    %189 = vector.load %arg11[%c0_79, %c0_80] : memref<1x32xf32, #tpu.memory_space<vmem>>, vector<1x32xf32>
    %190 = vector.broadcast %189 : vector<1x32xf32> to vector<16x32xf32>
    %191 = arith.addf %188, %190 : vector<16x32xf32>
    %c0_81 = arith.constant 0 : index
    %c0_82 = arith.constant 0 : index
    %192 = vector.load %arg3[%c0_81, %c0_82] : memref<2x16xf32, #tpu.memory_space<vmem>>, vector<2x16xf32>
    %193 = arith.negf %192 : vector<2x16xf32>
    %194 = math.exp %193 : vector<2x16xf32>
    %cst_83 = arith.constant 1.000000e+00 : f32
    %195 = vector.broadcast %cst_83 : f32 to vector<2x16xf32>
    %196 = arith.addf %195, %194 : vector<2x16xf32>
    %197 = arith.divf %195, %196 : vector<2x16xf32>
    %198 = arith.mulf %192, %197 : vector<2x16xf32>
    %c0_84 = arith.constant 0 : index
    %c0_85 = arith.constant 0 : index
    %199 = vector.load %arg12[%c0_84, %c0_85] : memref<16x64xf32, #tpu.memory_space<vmem>>, vector<16x64xf32>
    %cst_86 = arith.constant dense<0.000000e+00> : vector<2x64xf32>
    %200 = tpu.matmul %198, %199, %cst_86 {dimension_numbers = #tpu.dot_dimension_numbers<[1], [0], [0], [1], [0, 0, 1, 1], [], []>} : vector<2x16xf32>, vector<16x64xf32>, vector<2x64xf32> -> vector<2x64xf32>
    %c0_87 = arith.constant 0 : index
    %c0_88 = arith.constant 0 : index
    %201 = vector.load %arg13[%c0_87, %c0_88] : memref<1x64xf32, #tpu.memory_space<vmem>>, vector<1x64xf32>
    %202 = vector.broadcast %201 : vector<1x64xf32> to vector<2x64xf32>
    %203 = arith.addf %200, %202 : vector<2x64xf32>
    %204 = vector.extract_strided_slice %203 {offsets = [0, 0], sizes = [2, 32], strides = [1, 1]} : vector<2x64xf32> to vector<2x32xf32>
    %205 = vector.extract_strided_slice %203 {offsets = [0, 32], sizes = [2, 32], strides = [1, 1]} : vector<2x64xf32> to vector<2x32xf32>
    %c0_89 = arith.constant 0 : index
    %c0_90 = arith.constant 0 : index
    %206 = vector.load %arg14[%c0_89, %c0_90] : memref<1x32xf32, #tpu.memory_space<vmem>>, vector<1x32xf32>
    %c0_91 = arith.constant 0 : index
    %c0_92 = arith.constant 0 : index
    %207 = vector.load %arg15[%c0_91, %c0_92] : memref<1x32xf32, #tpu.memory_space<vmem>>, vector<1x32xf32>
    %cst_93 = arith.constant dense<0.000000e+00> : vector<16xf32>
    %208 = vector.multi_reduction <add>, %191, %cst_93 [1] : vector<16x32xf32> to vector<16xf32>
    %209 = vector.shape_cast %208 : vector<16xf32> to vector<16x1xf32>
    %cst_94 = arith.constant 3.200000e+01 : f32
    %210 = vector.broadcast %cst_94 : f32 to vector<16x1xf32>
    %211 = arith.divf %209, %210 : vector<16x1xf32>
    %212 = vector.broadcast %211 : vector<16x1xf32> to vector<16x32xf32>
    %213 = arith.subf %191, %212 : vector<16x32xf32>
    %214 = arith.mulf %213, %213 : vector<16x32xf32>
    %cst_95 = arith.constant dense<0.000000e+00> : vector<16xf32>
    %215 = vector.multi_reduction <add>, %214, %cst_95 [1] : vector<16x32xf32> to vector<16xf32>
    %216 = vector.shape_cast %215 : vector<16xf32> to vector<16x1xf32>
    %cst_96 = arith.constant 3.200000e+01 : f32
    %217 = vector.broadcast %cst_96 : f32 to vector<16x1xf32>
    %218 = arith.divf %216, %217 : vector<16x1xf32>
    %219 = vector.broadcast %211 : vector<16x1xf32> to vector<16x32xf32>
    %220 = arith.subf %191, %219 : vector<16x32xf32>
    %cst_97 = arith.constant 9.99999974E-6 : f32
    %221 = vector.broadcast %cst_97 : f32 to vector<16x1xf32>
    %222 = arith.addf %218, %221 : vector<16x1xf32>
    %223 = math.rsqrt %222 : vector<16x1xf32>
    %224 = vector.broadcast %223 : vector<16x1xf32> to vector<16x32xf32>
    %225 = arith.mulf %220, %224 : vector<16x32xf32>
    %226 = vector.broadcast %206 : vector<1x32xf32> to vector<16x32xf32>
    %227 = arith.mulf %225, %226 : vector<16x32xf32>
    %228 = vector.broadcast %207 : vector<1x32xf32> to vector<16x32xf32>
    %229 = arith.addf %227, %228 : vector<16x32xf32>
    %230 = vector.extract_strided_slice %229 {offsets = [0, 0], sizes = [8, 32], strides = [1, 1]} : vector<16x32xf32> to vector<8x32xf32>
    %231 = vector.extract_strided_slice %204 {offsets = [0, 0], sizes = [1, 32], strides = [1, 1]} : vector<2x32xf32> to vector<1x32xf32>
    %cst_98 = arith.constant 1.000000e+00 : f32
    %232 = vector.broadcast %cst_98 : f32 to vector<1x32xf32>
    %233 = arith.addf %232, %231 : vector<1x32xf32>
    %234 = vector.broadcast %233 : vector<1x32xf32> to vector<8x32xf32>
    %235 = arith.mulf %230, %234 : vector<8x32xf32>
    %236 = vector.extract_strided_slice %205 {offsets = [0, 0], sizes = [1, 32], strides = [1, 1]} : vector<2x32xf32> to vector<1x32xf32>
    %237 = vector.broadcast %236 : vector<1x32xf32> to vector<8x32xf32>
    %238 = arith.addf %235, %237 : vector<8x32xf32>
    %239 = vector.extract_strided_slice %229 {offsets = [8, 0], sizes = [8, 32], strides = [1, 1]} : vector<16x32xf32> to vector<8x32xf32>
    %240 = vector.extract_strided_slice %204 {offsets = [1, 0], sizes = [1, 32], strides = [1, 1]} : vector<2x32xf32> to vector<1x32xf32>
    %cst_99 = arith.constant 1.000000e+00 : f32
    %241 = vector.broadcast %cst_99 : f32 to vector<1x32xf32>
    %242 = arith.addf %241, %240 : vector<1x32xf32>
    %243 = vector.broadcast %242 : vector<1x32xf32> to vector<8x32xf32>
    %244 = arith.mulf %239, %243 : vector<8x32xf32>
    %245 = vector.extract_strided_slice %205 {offsets = [1, 0], sizes = [1, 32], strides = [1, 1]} : vector<2x32xf32> to vector<1x32xf32>
    %246 = vector.broadcast %245 : vector<1x32xf32> to vector<8x32xf32>
    %247 = arith.addf %244, %246 : vector<8x32xf32>
    %248 = tpu.concatenate %238, %247 in 0 : vector<8x32xf32>, vector<8x32xf32> -> vector<16x32xf32>
    %249 = arith.negf %248 : vector<16x32xf32>
    %250 = math.exp %249 : vector<16x32xf32>
    %cst_100 = arith.constant 1.000000e+00 : f32
    %251 = vector.broadcast %cst_100 : f32 to vector<16x32xf32>
    %252 = arith.addf %251, %250 : vector<16x32xf32>
    %253 = arith.divf %251, %252 : vector<16x32xf32>
    %254 = arith.mulf %248, %253 : vector<16x32xf32>
    %c0_101 = arith.constant 0 : index
    %c0_102 = arith.constant 0 : index
    %255 = vector.load %arg16[%c0_101, %c0_102] : memref<32x32xf32, #tpu.memory_space<vmem>>, vector<32x32xf32>
    %cst_103 = arith.constant dense<0.000000e+00> : vector<16x32xf32>
    %256 = tpu.matmul %254, %255, %cst_103 {dimension_numbers = #tpu.dot_dimension_numbers<[1], [0], [0], [1], [0, 0, 1, 1], [], []>} : vector<16x32xf32>, vector<32x32xf32>, vector<16x32xf32> -> vector<16x32xf32>
    %c0_104 = arith.constant 0 : index
    %c0_105 = arith.constant 0 : index
    %257 = vector.load %arg17[%c0_104, %c0_105] : memref<1x32xf32, #tpu.memory_space<vmem>>, vector<1x32xf32>
    %258 = vector.broadcast %257 : vector<1x32xf32> to vector<16x32xf32>
    %259 = arith.addf %256, %258 : vector<16x32xf32>
    %260 = arith.addf %259, %0 : vector<16x32xf32>
    %c0_106 = arith.constant 0 : index
    %c0_107 = arith.constant 0 : index
    %261 = vector.load %arg18[%c0_106, %c0_107] : memref<1x32xf32, #tpu.memory_space<vmem>>, vector<1x32xf32>
    %c0_108 = arith.constant 0 : index
    %c0_109 = arith.constant 0 : index
    %262 = vector.load %arg19[%c0_108, %c0_109] : memref<1x32xf32, #tpu.memory_space<vmem>>, vector<1x32xf32>
    %cst_110 = arith.constant dense<0.000000e+00> : vector<16xf32>
    %263 = vector.multi_reduction <add>, %260, %cst_110 [1] : vector<16x32xf32> to vector<16xf32>
    %264 = vector.shape_cast %263 : vector<16xf32> to vector<16x1xf32>
    %cst_111 = arith.constant 3.200000e+01 : f32
    %265 = vector.broadcast %cst_111 : f32 to vector<16x1xf32>
    %266 = arith.divf %264, %265 : vector<16x1xf32>
    %267 = vector.broadcast %266 : vector<16x1xf32> to vector<16x32xf32>
    %268 = arith.subf %260, %267 : vector<16x32xf32>
    %269 = arith.mulf %268, %268 : vector<16x32xf32>
    %cst_112 = arith.constant dense<0.000000e+00> : vector<16xf32>
    %270 = vector.multi_reduction <add>, %269, %cst_112 [1] : vector<16x32xf32> to vector<16xf32>
    %271 = vector.shape_cast %270 : vector<16xf32> to vector<16x1xf32>
    %cst_113 = arith.constant 3.200000e+01 : f32
    %272 = vector.broadcast %cst_113 : f32 to vector<16x1xf32>
    %273 = arith.divf %271, %272 : vector<16x1xf32>
    %274 = vector.broadcast %266 : vector<16x1xf32> to vector<16x32xf32>
    %275 = arith.subf %260, %274 : vector<16x32xf32>
    %cst_114 = arith.constant 9.99999997E-7 : f32
    %276 = vector.broadcast %cst_114 : f32 to vector<16x1xf32>
    %277 = arith.addf %273, %276 : vector<16x1xf32>
    %278 = math.rsqrt %277 : vector<16x1xf32>
    %279 = vector.broadcast %278 : vector<16x1xf32> to vector<16x32xf32>
    %280 = arith.mulf %275, %279 : vector<16x32xf32>
    %281 = vector.broadcast %261 : vector<1x32xf32> to vector<16x32xf32>
    %282 = arith.mulf %280, %281 : vector<16x32xf32>
    %283 = vector.broadcast %262 : vector<1x32xf32> to vector<16x32xf32>
    %284 = arith.addf %282, %283 : vector<16x32xf32>
    %c0_115 = arith.constant 0 : index
    %c0_116 = arith.constant 0 : index
    %285 = vector.load %arg20[%c0_115, %c0_116] : memref<16x32xf32, #tpu.memory_space<vmem>>, vector<16x32xf32>
    tpu.vector_store %arg20[%c0_115, %c0_116], %284 {strides = array<i32>} : memref<16x32xf32, #tpu.memory_space<vmem>>, vector<16x32xf32>,
    return
  }
}

</mosaic_0001>

<bundles_post_ra>
// kernel: multi_head_attention_forward.1
= control target key start
LH: loop header
LB: loop body
LE: loop exit
PB: predicated region body
PF: predicated region fallthrough
CT: control target
= control target key end

     0   :  { %s3515_s0 = inlined_call_operand.vmem [shape: f32[16,32], index: 0, kind: input, shape index: {}]   ;;  %s3516_s1 = inlined_call_operand.hbm [shape: f32[16,32], index: 1, kind: input, shape index: {}]   ;;  %s3517_s2 = inlined_call_operand.hbm [shape: f32[16,32], index: 2, kind: input, shape index: {}]   ;;  %s3518_s3 = inlined_call_operand.vmem [shape: f32[2,16], index: 3, kind: input, shape index: {}]   ;;  %s3519_s4 = inlined_call_operand.vmem [shape: f32[32,32], index: 4, kind: input, shape index: {}]   ;;  %s3520_s5 = inlined_call_operand.vmem [shape: f32[1,32], index: 5, kind: input, shape index: {}]   ;;  %s3521_s6 = inlined_call_operand.hbm [shape: f32[32,32], index: 6, kind: input, shape index: {}]   ;;  %s3522_s7 = inlined_call_operand.hbm [shape: f32[1,32], index: 7, kind: input, shape index: {}]   ;;  %s3523_s8 = inlined_call_operand.hbm [shape: f32[32,32], index: 8, kind: input, shape index: {}]   ;;  %s3524_s9 = inlined_call_operand.hbm [shape: f32[1,32], index: 9, kind: input, shape index: {}]   ;;  %s3525_s10 = inlined_call_operand.hbm [shape: f32[32,32], index: 10, kind: input, shape index: {}]   ;;  %s3526_s11 = inlined_call_operand.hbm [shape: f32[1,32], index: 11, kind: input, shape index: {}]   ;;  %s3527_s12 = inlined_call_operand.hbm [shape: f32[16,64], index: 12, kind: input, shape index: {}]   ;;  %s3528_s13 = inlined_call_operand.hbm [shape: f32[1,64], index: 13, kind: input, shape index: {}]   ;;  %s3529_s14 = inlined_call_operand.hbm [shape: f32[1,32], index: 14, kind: input, shape index: {}]   ;;  %s3530_s15 = inlined_call_operand.hbm [shape: f32[1,32], index: 15, kind: input, shape index: {}]   ;;  %s3531_s16 = inlined_call_operand.hbm [shape: f32[32,32], index: 16, kind: input, shape index: {}]   ;;  %s3532_s17 = inlined_call_operand.hbm [shape: f32[1,32], index: 17, kind: input, shape index: {}]   ;;  %s3533_s18 = inlined_call_operand.hbm [shape: f32[1,32], index: 18, kind: input, shape index: {}]   ;;  %s3534_s19 = inlined_call_operand.hbm [shape: f32[1,32], index: 19, kind: input, shape index: {}]   ;;  %s3535_s20 = inlined_call_operand.hbm [shape: f32[16,32], index: 20, kind: output, shape index: {0}]   ;;  %s3536_s21 = inlined_call_operand.hbm [shape: f32[8,8,8], index: 21, kind: output, shape index: {1}]  }
   0x1   :  { %3539 = sst [smem:[#allocation42_spill]] %s3515_s0 }
   0x2   :  { %3540 = sst [smem:[#allocation43_spill]] %s3516_s1 }
   0x3   :  { %3541 = sst [smem:[#allocation44_spill]] %s3517_s2 }
   0x4   :  { %3542 = sst [smem:[#allocation45_spill]] %s3518_s3 }
   0x5   :  { %3543 = sst [smem:[#allocation46_spill]] %s3519_s4 }
   0x6   :  { %3544 = sst [smem:[#allocation47_spill]] %s3520_s5 }
   0x7   :  { %27 = vsyncpa [#allocation3], 0 }
   0x8   :  { %28 = vsyncpa [#allocation6], 0 }
   0x9   :  { %29 = vsyncpa [#allocation9], 0 }
   0xa   :  { %30 = vsyncpa [#allocation12], 0 }
   0xb   :  { %31 = vsyncpa [#allocation15], 0 }
   0xc   :  { %32 = vsyncpa [#allocation18], 0 }
   0xd   :  { %33 = vsyncpa [#allocation21], 0 }
   0xe   :  { %34 = vsyncpa [#allocation24], 0 }
   0xf   :  { %35 = vsyncpa [#allocation27], 0 }
  0x10   :  { %36 = vsyncpa [#allocation4], 0 }
  0x11   :  { %37 = vsyncpa [#allocation30], 0  ;;  %s3087_s2 = smov [#allocation5]   ;;  %s3088_s26 = smov [#allocation8]  }
  0x12   :  { %s57_s25 = sshll.u32 %s3087_s2, 4  ;;  %s88_s27 = sshll.u32 %s3088_s26, 4  ;;  %s58_s25 = int_to_ptr.vmem [resolvable:$true] %s57_s25  ;;  %s89_s27 = int_to_ptr.vmem [resolvable:$true] %s88_s27 }
  0x13   :  { %s2713_s3 = scalar_lea.vmem %s58_s25, 256  ;;  %p2718_p1 = scmp.lt.s32.totalorder %s58_s25, %s58_s25 }
  0x14   :  { %p2714_p0 = scmp.ne.s32.totalorder %s58_s25, %s2713_s3  ;;  %p2719_p2 = scmp.lt.s32.totalorder %s2713_s3, %s2713_s3 }
  0x16   :  { %p2720_p3 = por %p2719_p2, %p2718_p1 }
  0x18   :  { %p2721_p4 = pnand %p2720_p3, %p2714_p0 }
  0x1a   :  { %2724 = shalt.err (!%p2721_p4)
}
  0x1b   :  { %s3089_s28 = smov 128   ;;  %s3090_s29 = smov 8  }
  0x1c   :  { %s3545_s30 = sld [smem:[#allocation44_spill]]  ;;  %s2733_s5 = scalar_lea.vmem %s89_s27, 16 }
  0x1d   :  { %p2734_p5 = scmp.ne.s32.totalorder %s89_s27, %s2733_s5  ;;  %s2737_s22 = scalar_lea.vmem %s89_s27, 32 }
  0x1e   :  { %p2738_p6 = scmp.lt.s32.totalorder %s89_s27, %s89_s27  ;;  %p2739_p7 = scmp.lt.s32.totalorder %s2737_s22, %s2733_s5 }
  0x20   :  { %p2740_p8 = por %p2739_p7, %p2738_p6 }
  0x22   :  { %63 = dma.hbm_to_vmem [thread:$0]  %s3545_s30, 256, %s58_s25, [#allocation6], %s3089_s28, %s3089_s28, %s3090_s29  }
  0x23   :  { %p2741_p9 = pnand %p2740_p8, %p2734_p5 }
  0x25   :  { %2744 = shalt.err (!%p2741_p9)
}
  0x26   :  { %91 = dma.hbm_to_vmem [thread:$0]  %s3522_s7, 16, %s89_s27, [#allocation9]  }
  0x27   :  { %s3091_s24 = smov [#allocation11]   ;;  %s3092_s26 = smov [#allocation14]  }
  0x28   :  { %s110_s2 = sshll.u32 %s3091_s24, 4  ;;  %s132_s3 = sshll.u32 %s3092_s26, 4  ;;  %s111_s2 = int_to_ptr.vmem [resolvable:$true] %s110_s2  ;;  %s133_s3 = int_to_ptr.vmem [resolvable:$true] %s132_s3 }
  0x29   :  { %s2753_s0 = scalar_lea.vmem %s111_s2, 16  ;;  %s2757_s25 = scalar_lea.vmem %s111_s2, 32 }
  0x2a   :  { %p2754_p10 = scmp.ne.s32.totalorder %s111_s2, %s2753_s0  ;;  %p2758_p11 = scmp.lt.s32.totalorder %s111_s2, %s111_s2 }
  0x2b   :  { %p2759_p12 = scmp.lt.s32.totalorder %s2757_s25, %s2753_s0 }
  0x2d   :  { %p2760_p13 = por %p2759_p12, %p2758_p11 }
  0x2f   :  { %p2761_p0 = pnand %p2760_p13, %p2754_p10 }
  0x31   :  { %2764 = shalt.err (!%p2761_p0)
}
  0x32   :  { %113 = dma.hbm_to_vmem [thread:$0]  %s3524_s9, 16, %s111_s2, [#allocation12]  }
  0x33   :  { %s2773_s5 = scalar_lea.vmem %s133_s3, 16  ;;  %s2777_s7 = scalar_lea.vmem %s133_s3, 32 }
  0x34   :  { %p2774_p1 = scmp.ne.s32.totalorder %s133_s3, %s2773_s5  ;;  %p2778_p2 = scmp.lt.s32.totalorder %s133_s3, %s133_s3 }
  0x35   :  { %p2779_p3 = scmp.lt.s32.totalorder %s2777_s7, %s2773_s5 }
  0x37   :  { %p2780_p4 = por %p2779_p3, %p2778_p2 }
  0x39   :  { %p2781_p5 = pnand %p2780_p4, %p2774_p1 }
  0x3b   :  { %2784 = shalt.err (!%p2781_p5)
}
  0x3c   :  { %135 = dma.hbm_to_vmem [thread:$0]  %s3526_s11, 16, %s133_s3, [#allocation15]  }
  0x3d   :  { %s3093_s23 = smov [#allocation17]   ;;  %s3094_s24 = smov [#allocation20]  }
  0x3e   :  { %s154_s1 = sshll.u32 %s3093_s23, 4  ;;  %s174_s26 = sshll.u32 %s3094_s24, 4  ;;  %s155_s1 = int_to_ptr.vmem [resolvable:$true] %s154_s1  ;;  %s175_s26 = int_to_ptr.vmem [resolvable:$true] %s174_s26 }
  0x3f   :  { %s2793_s0 = scalar_lea.vmem %s155_s1, 16  ;;  %s2797_s9 = scalar_lea.vmem %s155_s1, 32 }
  0x40   :  { %p2794_p6 = scmp.ne.s32.totalorder %s155_s1, %s2793_s0  ;;  %p2798_p7 = scmp.lt.s32.totalorder %s155_s1, %s155_s1 }
  0x41   :  { %p2799_p8 = scmp.lt.s32.totalorder %s2797_s9, %s2793_s0 }
  0x43   :  { %p2800_p9 = por %p2799_p8, %p2798_p7 }
  0x45   :  { %p2801_p10 = pnand %p2800_p9, %p2794_p6 }
  0x47   :  { %2804 = shalt.err (!%p2801_p10)
}
  0x48   :  { %157 = dma.hbm_to_vmem [thread:$0]  %s3528_s13, 16, %s155_s1, [#allocation18]  }
  0x49   :  { %s2813_s4 = scalar_lea.vmem %s175_s26, 16  ;;  %s2817_s11 = scalar_lea.vmem %s175_s26, 32 }
  0x4a   :  { %p2814_p11 = scmp.ne.s32.totalorder %s175_s26, %s2813_s4  ;;  %p2818_p12 = scmp.lt.s32.totalorder %s175_s26, %s175_s26 }
  0x4b   :  { %p2819_p13 = scmp.lt.s32.totalorder %s2817_s11, %s2813_s4 }
  0x4d   :  { %p2820_p0 = por %p2819_p13, %p2818_p12 }
  0x4f   :  { %p2821_p1 = pnand %p2820_p0, %p2814_p11 }
  0x51   :  { %2824 = shalt.err (!%p2821_p1)
}
  0x52   :  { %177 = dma.hbm_to_vmem [thread:$0]  %s3530_s15, 16, %s175_s26, [#allocation21]  }
  0x53   :  { %s3095_s5 = smov [#allocation23]   ;;  %s3096_s27 = smov [#allocation2]  }
  0x54   :  { %s196_s7 = sshll.u32 %s3095_s5, 4  ;;  %s45_s22 = sshll.u32 %s3096_s27, 4  ;;  %s197_s7 = int_to_ptr.vmem [resolvable:$true] %s196_s7  ;;  %s46_s22 = int_to_ptr.vmem [resolvable:$true] %s45_s22 }
  0x55   :  { %s2833_s23 = scalar_lea.vmem %s197_s7, 16  ;;  %s2837_s13 = scalar_lea.vmem %s197_s7, 32 }
  0x56   :  { %p2834_p2 = scmp.ne.s32.totalorder %s197_s7, %s2833_s23  ;;  %p2838_p3 = scmp.lt.s32.totalorder %s197_s7, %s197_s7 }
  0x57   :  { %p2839_p4 = scmp.lt.s32.totalorder %s2837_s13, %s2833_s23 }
  0x59   :  { %p2840_p5 = por %p2839_p4, %p2838_p3 }
  0x5b   :  { %p2841_p6 = pnand %p2840_p5, %p2834_p2 }
  0x5d   :  { %2844 = shalt.err (!%p2841_p6)
}
  0x5e   :  { %199 = dma.hbm_to_vmem [thread:$0]  %s3532_s17, 16, %s197_s7, [#allocation24]  }
  0x5f   :  { %s2853_s0 = scalar_lea.vmem %s46_s22, 256  ;;  %p2858_p8 = scmp.lt.s32.totalorder %s46_s22, %s46_s22 }
  0x60   :  { %p2854_p7 = scmp.ne.s32.totalorder %s46_s22, %s2853_s0  ;;  %p2859_p9 = scmp.lt.s32.totalorder %s2853_s0, %s2853_s0 }
  0x62   :  { %p2860_p10 = por %p2859_p9, %p2858_p8 }
  0x64   :  { %p2861_p11 = pnand %p2860_p10, %p2854_p7 }
  0x66   :  { %2864 = shalt.err (!%p2861_p11)
}
  0x67   :  { %s3546_s9 = sld [smem:[#allocation43_spill]]  ;;  %s3097_s2 = smov [#allocation7]  }
  0x68   :  { %s75_s25 = sshll.u32 %s3097_s2, 4  ;;  %s3098_s4 = smov [#allocation10]   ;;  %s76_s25 = int_to_ptr.vmem [resolvable:$true] %s75_s25 }
  0x69   :  { %s97_s11 = sshll.u32 %s3098_s4, 4  ;;  %s2873_s17 = scalar_lea.vmem %s76_s25, 512  ;;  %s98_s11 = int_to_ptr.vmem [resolvable:$true] %s97_s11 }
  0x6a   :  { %p2874_p12 = scmp.ne.s32.totalorder %s76_s25, %s2873_s17  ;;  %p2878_p13 = scmp.lt.s32.totalorder %s76_s25, %s76_s25 }
  0x6b   :  { %p2879_p0 = scmp.lt.s32.totalorder %s2873_s17, %s2873_s17 }
  0x6d   :  { %51 = dma.hbm_to_vmem [thread:$0]  %s3546_s9, 256, %s46_s22, [#allocation3], %s3089_s28, %s3089_s28, %s3090_s29  }
  0x6e   :  { %p2880_p1 = por %p2879_p0, %p2878_p13 }
  0x70   :  { %p2881_p2 = pnand %p2880_p1, %p2874_p12 }
  0x72   :  { %2884 = shalt.err (!%p2881_p2)
}
  0x73   :  { %81 = dma.hbm_to_vmem [thread:$0]  %s3521_s6, 512, %s76_s25, [#allocation6], %s3089_s28, %s3089_s28, %s3090_s29  }
  0x74   :  { %s2893_s5 = scalar_lea.vmem %s98_s11, 512  ;;  %p2898_p4 = scmp.lt.s32.totalorder %s98_s11, %s98_s11 }
  0x75   :  { %p2894_p3 = scmp.ne.s32.totalorder %s98_s11, %s2893_s5  ;;  %p2899_p5 = scmp.lt.s32.totalorder %s2893_s5, %s2893_s5 }
  0x77   :  { %p2900_p6 = por %p2899_p5, %p2898_p4 }
  0x79   :  { %p2901_p7 = pnand %p2900_p6, %p2894_p3 }
  0x7b   :  { %2904 = shalt.err (!%p2901_p7)
}
  0x7c   :  { %103 = dma.hbm_to_vmem [thread:$0]  %s3523_s8, 512, %s98_s11, [#allocation9], %s3089_s28, %s3089_s28, %s3090_s29  }
  0x7d   :  { %s3099_s22 = smov [#allocation13]   ;;  %s3100_s13 = smov [#allocation16]  }
  0x7e   :  { %s119_s23 = sshll.u32 %s3099_s22, 4  ;;  %s141_s1 = sshll.u32 %s3100_s13, 4  ;;  %s120_s23 = int_to_ptr.vmem [resolvable:$true] %s119_s23  ;;  %s142_s1 = int_to_ptr.vmem [resolvable:$true] %s141_s1 }
  0x7f   :  { %s2913_s6 = scalar_lea.vmem %s120_s23, 512  ;;  %p2918_p9 = scmp.lt.s32.totalorder %s120_s23, %s120_s23 }
  0x80   :  { %p2914_p8 = scmp.ne.s32.totalorder %s120_s23, %s2913_s6  ;;  %p2919_p10 = scmp.lt.s32.totalorder %s2913_s6, %s2913_s6 }
  0x82   :  { %p2920_p11 = por %p2919_p10, %p2918_p9 }
  0x84   :  { %p2921_p12 = pnand %p2920_p11, %p2914_p8 }
  0x86   :  { %2924 = shalt.err (!%p2921_p12)
}
  0x87   :  { %125 = dma.hbm_to_vmem [thread:$0]  %s3525_s10, 512, %s120_s23, [#allocation12], %s3089_s28, %s3089_s28, %s3090_s29  }
  0x88   :  { %s2933_s8 = scalar_lea.vmem %s142_s1, 256  ;;  %p2938_p0 = scmp.lt.s32.totalorder %s142_s1, %s142_s1 }
  0x89   :  { %p2934_p13 = scmp.ne.s32.totalorder %s142_s1, %s2933_s8  ;;  %p2939_p1 = scmp.lt.s32.totalorder %s2933_s8, %s2933_s8 }
  0x8b   :  { %p2940_p2 = por %p2939_p1, %p2938_p0 }
  0x8d   :  { %p2941_p3 = pnand %p2940_p2, %p2934_p13 }
  0x8f   :  { %2944 = shalt.err (!%p2941_p3)
}
  0x90   :  { %147 = dma.hbm_to_vmem [thread:$0]  %s3527_s12, 256, %s142_s1, [#allocation15], %s3089_s28, %s3089_s28, %s3090_s29  }
  0x91   :  { %s3101_s9 = smov [#allocation19]   ;;  %s3102_s25 = smov [#allocation22]  }
  0x92   :  { %s164_s2 = sshll.u32 %s3101_s9, 4  ;;  %s183_s4 = sshll.u32 %s3102_s25, 4  ;;  %s165_s2 = int_to_ptr.vmem [resolvable:$true] %s164_s2  ;;  %s184_s4 = int_to_ptr.vmem [resolvable:$true] %s183_s4 }
  0x93   :  { %s2953_s10 = scalar_lea.vmem %s165_s2, 16  ;;  %s2957_s11 = scalar_lea.vmem %s165_s2, 32 }
  0x94   :  { %p2954_p4 = scmp.ne.s32.totalorder %s165_s2, %s2953_s10  ;;  %p2958_p5 = scmp.lt.s32.totalorder %s165_s2, %s165_s2 }
  0x95   :  { %p2959_p6 = scmp.lt.s32.totalorder %s2957_s11, %s2953_s10 }
  0x97   :  { %p2960_p7 = por %p2959_p6, %p2958_p5 }
  0x99   :  { %p2961_p8 = pnand %p2960_p7, %p2954_p4 }
  0x9b   :  { %2964 = shalt.err (!%p2961_p8)
}
  0x9c   :  { %167 = dma.hbm_to_vmem [thread:$0]  %s3529_s14, 16, %s165_s2, [#allocation18]  }
  0x9d   :  { %s2973_s30 = scalar_lea.vmem %s184_s4, 512  ;;  %p2978_p10 = scmp.lt.s32.totalorder %s184_s4, %s184_s4 }
  0x9e   :  { %p2974_p9 = scmp.ne.s32.totalorder %s184_s4, %s2973_s30  ;;  %p2979_p11 = scmp.lt.s32.totalorder %s2973_s30, %s2973_s30 }
  0xa0   :  { %p2980_p12 = por %p2979_p11, %p2978_p10 }
  0xa2   :  { %p2981_p13 = pnand %p2980_p12, %p2974_p9 }
  0xa4   :  { %2984 = shalt.err (!%p2981_p13)
}
  0xa5   :  { %189 = dma.hbm_to_vmem [thread:$0]  %s3531_s16, 512, %s184_s4, [#allocation21], %s3089_s28, %s3089_s28, %s3090_s29  }
  0xa6   :  { %s3103_s7 = smov [#allocation25]   ;;  %s3104_s22 = smov [#allocation26]  }
  0xa7   :  { %s206_s27 = sshll.u32 %s3103_s7, 4  ;;  %s216_s23 = sshll.u32 %s3104_s22, 4  ;;  %s207_s27 = int_to_ptr.vmem [resolvable:$true] %s206_s27  ;;  %s217_s23 = int_to_ptr.vmem [resolvable:$true] %s216_s23 }
  0xa8   :  { %s2993_s14 = scalar_lea.vmem %s207_s27, 16  ;;  %s2997_s13 = scalar_lea.vmem %s207_s27, 32 }
  0xa9   :  { %p2994_p0 = scmp.ne.s32.totalorder %s207_s27, %s2993_s14  ;;  %p2998_p1 = scmp.lt.s32.totalorder %s207_s27, %s207_s27 }
  0xaa   :  { %p2999_p2 = scmp.lt.s32.totalorder %s2997_s13, %s2993_s14 }
  0xac   :  { %p3000_p3 = por %p2999_p2, %p2998_p1 }
  0xae   :  { %p3001_p4 = pnand %p3000_p3, %p2994_p0 }
  0xb0   :  { %3004 = shalt.err (!%p3001_p4)
}
  0xb1   :  { %209 = dma.hbm_to_vmem [thread:$0]  %s3533_s18, 16, %s207_s27, [#allocation24]  }
  0xb2   :  { %s3013_s24 = scalar_lea.vmem %s217_s23, 16  ;;  %s3017_s16 = scalar_lea.vmem %s217_s23, 32 }
  0xb3   :  { %p3014_p5 = scmp.ne.s32.totalorder %s217_s23, %s3013_s24  ;;  %p3018_p6 = scmp.lt.s32.totalorder %s217_s23, %s217_s23 }
  0xb4   :  { %p3019_p7 = scmp.lt.s32.totalorder %s3017_s16, %s3013_s24 }
  0xb6   :  { %p3020_p8 = por %p3019_p7, %p3018_p6 }
  0xb8   :  { %p3021_p9 = pnand %p3020_p8, %p3014_p5 }
  0xba   :  { %3024 = shalt.err (!%p3021_p9)
}
  0xbb   :  { %219 = dma.hbm_to_vmem [thread:$0]  %s3534_s19, 16, %s217_s23, [#allocation27]  }
  0xbc   :  { %3065 = dma.done.wait [#allocation3], 256  }
  0xbd   :  { %3066 = vsyncadd [#allocation3], 4294967040 }
  0xbe   :  { %3067 = dma.done.wait [#allocation6], 768  }
  0xbf   :  { %3068 = vsyncadd [#allocation6], 4294966528 }
  0xc0   :  { %3069 = dma.done.wait [#allocation9], 528  }
  0xc1   :  { %3070 = vsyncadd [#allocation9], 4294966768 }
  0xc2   :  { %3071 = dma.done.wait [#allocation12], 528  }
  0xc3   :  { %3072 = vsyncadd [#allocation12], 4294966768 }
  0xc4   :  { %3073 = dma.done.wait [#allocation15], 272  }
  0xc5   :  { %3074 = vsyncadd [#allocation15], 4294967024 }
  0xc6   :  { %3075 = dma.done.wait [#allocation18], 32  }
  0xc7   :  { %3076 = vsyncadd [#allocation18], 4294967264 }
  0xc8   :  { %3077 = dma.done.wait [#allocation21], 528  }
  0xc9   :  { %3078 = vsyncadd [#allocation21], 4294966768 }
  0xca   :  { %3079 = dma.done.wait [#allocation24], 32  }
  0xcb   :  { %3080 = vsyncadd [#allocation24], 4294967264 }
  0xcc   :  { %3081 = dma.done.wait [#allocation27], 16  }
  0xcd   :  { %3082 = vsyncadd [#allocation27], 4294967280  ;;  %v370_v0 = vld [vmem:[#allocation7 + $0x18] sm:$0xff]  ;;  %s3547_s15 = sld [smem:[#allocation46_spill]]  ;;  %v369_v2 = vld [vmem:[#allocation7 + $0x10] sm:$0xff]  ;;  %vm285_vm0 = vcmask 261120  }
  0xce   :  { %2494 = vmatprep.subr.mxu1 %v370_v0  ;;  %v368_v4 = vld [vmem:[#allocation7 + $0x8] sm:$0xff]  ;;  %v367_v6 = vld [vmem:[#allocation7] sm:$0xff]  ;;  %s3548_s3 = sld [smem:[#allocation42_spill]]  ;;  %v3105_v12 = vmov 0.0   ;;  %vm3106_vm1 = vmmov 0   ;;  %v461_v14 = vld [vmem:[#allocation10 + $0x10] sm:$0xff] }
  0xcf   :  { %2495 = vmatpush3.msra.mxu1 %v370_v0  ;;  %v270_v7 = vld [vmem:[#allocation2] sm:$0xff]  ;;  %v271_v9 = vld [vmem:[#allocation2 + $0x8] sm:$0xff]  ;;  %v272_v15 = vld [vmem:[#allocation5] sm:$0xff]  ;;  %s3549_s27 = sld [smem:[#allocation47_spill]]  ;;  %vm551_vm2 = vcmask 64512   ;;  %s3107_s22 = smov 112  }
  0xd0   :  { %2496 = vmatprep.subr.mxu1 %v369_v2  ;;  %2502 = vmatprep.mubr.msk.f32.mxu1 %vm285_vm0, %v270_v7  ;;  %v462_v13 = vld [vmem:[#allocation10 + $0x18] sm:$0xff]  ;;  %v460_v16 = vld [vmem:[#allocation10 + $0x8] sm:$0xff]  ;;  %v459_v17 = vld [vmem:[#allocation10] sm:$0xff]  ;;  %s3108_s23 = smov 120   ;;  %s3109_s14 = smov 104   ;;  %vm1232_vm3 = vcmask 130048  }
  0xd1   :  { %2497 = vmatpush3.msra.mxu1 %v369_v2  ;;  %v273_v18 = vld [vmem:[#allocation5 + $0x8] sm:$0xff]  ;;  %v2373_v20 = vld [vmem:[#allocation8] ss:$0 sm:$0xff]  ;;  %v2376_v29 = vld [vmem:[#allocation11] ss:$0 sm:$0xff]  ;;  %s3110_s13 = smov 16  }
  0xd2   :  { %2498 = vmatprep.subr.mxu1 %v368_v4  ;;  %s3111_s1 = smov 24   ;;  %vm1234_vm4 = vcmask 195584   ;;  %s3550_s16 = sld [smem:[#allocation45_spill]] }
  0xd3   :  { %v277_v1 = vld [vmem:[%s3547_s15 + $0x18] sm:$0xff]  ;;  %v276_v3 = vld [vmem:[%s3547_s15 + $0x10] sm:$0xff]  ;;  %v275_v5 = vld [vmem:[%s3547_s15 + $0x8] sm:$0xff]  ;;  %2499 = vmatpush3.msra.mxu1 %v368_v4  ;;  %s3112_s0 = smov 96   ;;  %s3113_s8 = smov [#allocation29]  }
  0xd4   :  { %2483 = vmatprep.subr.mxu0 %v277_v1  ;;  %v274_v8 = vld [vmem:[%s3547_s15] sm:$0xff]  ;;  %2500 = vmatprep.subr.mxu1 %v367_v6  ;;  %v3315_v11 = vld [vmem:[%s3548_s3 + $0x8] sm:$0xff]  ;;  %s2346_s18 = sshll.u32 %s3113_s8, 4  ;;  %s2347_s18 = int_to_ptr.vmem [resolvable:$true] %s2346_s18 }
  0xd5   :  { %2484 = vmatpush3.msra.mxu0 %v277_v1  ;;  %v3310_v10 = vld [vmem:[%s3548_s3] sm:$0xff]  ;;  %2501 = vmatpush3.msra.mxu1 %v367_v6  ;;  %s3025_s19 = scalar_lea.vmem %s2347_s18, 1024  ;;  %p3030_p11 = scmp.lt.s32.totalorder %s2347_s18, %s2347_s18 }
  0xd6   :  { %2485 = vmatprep.subr.mxu0 %v276_v3  ;;  %2503 = vmatmul.mubr.msk.f32.vlgmr.msra.gmra.mxu1 %vm285_vm0, %v271_v9  ;;  %v2370_v22 = vld [vmem:[%s3549_s27] ss:$0 sm:$0xff]  ;;  %p3026_p10 = scmp.ne.s32.totalorder %s2347_s18, %s3025_s19  ;;  %p3031_p12 = scmp.lt.s32.totalorder %s3025_s19, %s3025_s19 }
  0xd7   :  { %2486 = vmatpush3.msra.mxu0 %v276_v3  ;;  %2491 = vmatprep.mubr.msk.f32.mxu0 %vm285_vm0, %v3310_v10 }
  0xd8   :  { %2487 = vmatprep.subr.mxu0 %v275_v5  ;;  %2516 = vmatprep.subr.mxu1 %v3105_v12  ;;  %p3032_p13 = por %p3031_p12, %p3030_p11 }
  0xd9   :  { %2488 = vmatpush3.msra.mxu0 %v275_v5  ;;  %2518 = vmatprep.mubr.msk.f32.mxu1 %vm3106_vm1, %v3105_v12 }
  0xda   :  { %2489 = vmatprep.subr.mxu0 %v274_v8  ;;  %p3033_p0 = pnand %p3032_p13, %p3026_p10 }
  0xdb   :  { %2490 = vmatpush3.msra.mxu0 %v274_v8 }
  0xdc   :  { %2492 = vmatmul.mubr.msk.f32.vlgmr.msra.gmra.mxu0 %vm285_vm0, %v3315_v11  ;;  %2505 = vmatprep.subr.mxu0 %v462_v13 }
  0xdd   :  { %2506 = vmatpush3.msra.mxu0 %v462_v13  ;;  %2513 = vmatprep.mubr.msk.f32.mxu0 %vm285_vm0, %v272_v15 }
  0xde   :  { %2507 = vmatprep.subr.mxu0 %v461_v14 }
  0xdf   :  { %2508 = vmatpush3.msra.mxu0 %v461_v14 }
  0xe0   :  { %2509 = vmatprep.subr.mxu0 %v460_v16 }
  0xe1   :  { %2510 = vmatpush3.msra.mxu0 %v460_v16 }
  0xe2   :  { %2511 = vmatprep.subr.mxu0 %v459_v17 }
  0xe3   :  { %2512 = vmatpush3.msra.mxu0 %v459_v17 }
  0xe4   :  { %2514 = vmatmul.mubr.msk.f32.vlgmr.msra.gmra.mxu0 %vm285_vm0, %v273_v18  ;;  %2526 = vmatprep.subr.mxu0 %v3105_v12 }
  0xe5   :  { %2528 = vmatprep.mubr.msk.f32.mxu0 %vm3106_vm1, %v3105_v12 }
 0x196   :  { %v2504_v19 = vpop.f32.mrf.mxu1 }
 0x197   :  { %v456_v28 = vadd.f32 %v2504_v19, %v2373_v20 }
 0x198   :  { %v450_v23 = vpop.f32.mrf.mxu1 }
 0x199   :  { %v451_v24 = vadd.f32 %v2373_v20, %v450_v23 }
 0x19b   :  { %885 = vrot.lane.b32.xlu1 %v451_v24, %s3107_s22  ;;  %716 = vrot.lane.b32.xlu0 %v451_v24, %s3108_s23 }
 0x19c   :  { %v2493_v21 = vpop.f32.mrf.mxu0  ;;  %2517 = vmatpush3.xpose.msk.msra.mxu1 %vm551_vm2, %v451_v24 }
 0x19d   :  { %2521 = vmatprep.subr.mxu1 %v3105_v12  ;;  %v364_v27 = vadd.f32 %v2493_v21, %v2370_v22 }
 0x19e   :  { %v358_v25 = vpop.f32.mrf.mxu0 }
 0x19f   :  { %v359_v26 = vadd.f32 %v2370_v22, %v358_v25 }
 0x1a1   :  { %2519 = vmatmul.mubr.msk.f32.vlgmr.msra.gmra.mxu1 %vm551_vm2, %v359_v26  ;;  %883 = vrot.lane.b32.xlu1 %v359_v26, %s3107_s22 }
 0x1a2   :  { %714 = vrot.lane.b32.xlu0 %v359_v26, %s3108_s23  ;;  %2523 = vmatprep.mubr.msk.f32.mxu1 %vm3106_vm1, %v3105_v12 }
 0x1a4   :  { %v2515_v30 = vpop.f32.mrf.mxu0 }
 0x1a5   :  { %1051 = vrot.lane.b32.xlu1 %v359_v26, %s3109_s14  ;;  %v3350_v31 = vadd.f32 %v2515_v30, %v2376_v29 }
 0x1a6   :  { %1053 = vrot.lane.b32.xlu0 %v451_v24, %s3109_s14  ;;  %v542_v32 = vpop.f32.mrf.mxu0 }
 0x1a7   :  { %v3352_v33 = vadd.f32 %v2376_v29, %v542_v32 }
 0x1a9   :  { %1399 = vrot.lane.b32.xlu1 %v364_v27, %s3108_s23  ;;  %2522 = vmatpush3.msra.mxu1 %v3352_v33 }
 0x1aa   :  { %1401 = vrot.lane.b32.xlu0 %v456_v28, %s3108_s23  ;;  %2531 = vmatprep.subr.mxu1 %v3105_v12 }
 0x1ad   :  { %1568 = vrot.lane.b32.xlu1 %v364_v27, %s3107_s22 }
 0x1ae   :  { %1570 = vrot.lane.b32.xlu0 %v456_v28, %s3107_s22 }
 0x1b1   :  { %1736 = vrot.lane.b32.xlu1 %v364_v27, %s3109_s14 }
 0x1b2   :  { %1738 = vrot.lane.b32.xlu0 %v456_v28, %s3109_s14 }
 0x20d   :  { %v886_v34 = vpop.permute.xlu1 %885  ;;  %v717_v35 = vpop.permute.xlu0 %716 }
 0x20e   :  { %2527 = vmatpush3.xpose.msk.msra.mxu0 %vm551_vm2, %v717_v35 }
 0x20f   :  { %2536 = vmatprep.subr.mxu0 %v3105_v12 }
 0x213   :  { %v884_v36 = vpop.permute.xlu1 %883 }
 0x214   :  { %v715_v37 = vpop.permute.xlu0 %714 }
 0x215   :  { %2529 = vmatmul.mubr.msk.f32.vlgmr.msra.gmra.mxu0 %vm551_vm2, %v715_v37 }
 0x216   :  { %2537 = vmatpush3.xpose.msk.msra.mxu0 %vm551_vm2, %v886_v34  ;;  %2538 = vmatprep.mubr.msk.f32.mxu0 %vm3106_vm1, %v3105_v12 }
 0x217   :  { %2546 = vmatprep.subr.mxu0 %v3105_v12  ;;  %v1052_v39 = vpop.permute.xlu1 %1051 }
 0x218   :  { %v1054_v38 = vpop.permute.xlu0 %1053 }
 0x219   :  { %2539 = vmatmul.mubr.msk.f32.vlgmr.msra.gmra.mxu0 %vm551_vm2, %v884_v36 }
 0x21a   :  { %2547 = vmatpush3.xpose.msk.msra.mxu0 %vm551_vm2, %v1054_v38  ;;  %2548 = vmatprep.mubr.msk.f32.mxu0 %vm3106_vm1, %v3105_v12 }
 0x21b   :  { %2556 = vmatprep.subr.mxu0 %v3105_v12  ;;  %v1400_v41 = vpop.permute.xlu1 %1399 }
 0x21c   :  { %v1402_v40 = vpop.permute.xlu0 %1401 }
 0x21d   :  { %2549 = vmatmul.mubr.msk.f32.vlgmr.msra.gmra.mxu0 %vm551_vm2, %v1052_v39 }
 0x21e   :  { %2557 = vmatpush3.xpose.msk.msra.mxu0 %vm551_vm2, %v456_v28  ;;  %2558 = vmatprep.mubr.msk.f32.mxu0 %vm3106_vm1, %v3105_v12 }
 0x21f   :  { %2566 = vmatprep.subr.mxu0 %v3105_v12  ;;  %v1569_v43 = vpop.permute.xlu1 %1568 }
 0x220   :  { %v1571_v42 = vpop.permute.xlu0 %1570 }
 0x221   :  { %2559 = vmatmul.mubr.msk.f32.vlgmr.msra.gmra.mxu0 %vm551_vm2, %v364_v27 }
 0x222   :  { %2567 = vmatpush3.xpose.msk.msra.mxu0 %vm551_vm2, %v1402_v40  ;;  %2568 = vmatprep.mubr.msk.f32.mxu0 %vm3106_vm1, %v3105_v12 }
 0x223   :  { %2576 = vmatprep.subr.mxu0 %v3105_v12  ;;  %v1737_v45 = vpop.permute.xlu1 %1736 }
 0x224   :  { %v1739_v44 = vpop.permute.xlu0 %1738 }
 0x225   :  { %2569 = vmatmul.mubr.msk.f32.vlgmr.msra.gmra.mxu0 %vm551_vm2, %v1400_v41 }
 0x226   :  { %2577 = vmatpush3.xpose.msk.msra.mxu0 %vm551_vm2, %v1571_v42  ;;  %2578 = vmatprep.mubr.msk.f32.mxu0 %vm3106_vm1, %v3105_v12 }
 0x227   :  { %2586 = vmatprep.subr.mxu0 %v3105_v12 }
 0x229   :  { %2579 = vmatmul.mubr.msk.f32.vlgmr.msra.gmra.mxu0 %vm551_vm2, %v1569_v43 }
 0x22a   :  { %2587 = vmatpush3.xpose.msk.msra.mxu0 %vm551_vm2, %v1739_v44  ;;  %2588 = vmatprep.mubr.msk.f32.mxu0 %vm3106_vm1, %v3105_v12 }
 0x22d   :  { %2589 = vmatmul.mubr.msk.f32.vlgmr.msra.gmra.mxu0 %vm551_vm2, %v1737_v45 }
 0x261   :  { %v624_v46 = vpop.f32.mrf.mxu1 }
 0x262   :  { %v628_v47 = vmul.f32 0.35355338, %v624_v46 }
 0x263   :  { %v2520_v48 = vpop.f32.mrf.mxu1 }
 0x264   :  { %v629_v49 = vsel %vm551_vm2, %v628_v47, -inf }
 0x265   :  { %630 = vmax.xlane.f32.xlu0 %v629_v49 }
 0x2d5   :  { %v788_v50 = vpop.f32.mrf.mxu0 }
 0x2d6   :  { %v792_v51 = vmul.f32 0.35355338, %v788_v50 }
 0x2d7   :  { %v2530_v52 = vpop.f32.mrf.mxu0 }
 0x2d8   :  { %v793_v53 = vsel %vm551_vm2, %v792_v51, -inf }
 0x2d9   :  { %794 = vmax.xlane.f32.xlu1 %v793_v53  ;;  %v957_v54 = vpop.f32.mrf.mxu0 }
 0x2da   :  { %v961_v55 = vmul.f32 0.35355338, %v957_v54 }
 0x2db   :  { %v2540_v56 = vpop.f32.mrf.mxu0 }
 0x2dc   :  { %v962_v57 = vsel %vm551_vm2, %v961_v55, -inf }
 0x2dd   :  { %v1125_v58 = vpop.f32.mrf.mxu0  ;;  %963 = vmax.xlane.f32.xlu0 %v962_v57 }
 0x2de   :  { %v1129_v59 = vmul.f32 0.35355338, %v1125_v58 }
 0x2df   :  { %v2550_v60 = vpop.f32.mrf.mxu0 }
 0x2e0   :  { %v1130_v61 = vsel %vm551_vm2, %v1129_v59, -inf }
 0x2e1   :  { %v1308_v62 = vpop.f32.mrf.mxu0  ;;  %1131 = vmax.xlane.f32.xlu0 %v1130_v61 }
 0x2e2   :  { %v1312_v63 = vmul.f32 0.35355338, %v1308_v62 }
 0x2e3   :  { %v2560_v0 = vpop.f32.mrf.mxu0 }
 0x2e4   :  { %v1313_v1 = vsel %vm551_vm2, %v1312_v63, -inf }
 0x2e5   :  { %1314 = vmax.xlane.f32.xlu1 %v1313_v1  ;;  %v1473_v2 = vpop.f32.mrf.mxu0 }
 0x2e6   :  { %v1477_v3 = vmul.f32 0.35355338, %v1473_v2 }
 0x2e7   :  { %v2570_v4 = vpop.f32.mrf.mxu0 }
 0x2e8   :  { %v1478_v5 = vsel %vm551_vm2, %v1477_v3, -inf }
 0x2e9   :  { %v1642_v6 = vpop.f32.mrf.mxu0  ;;  %1479 = vmax.xlane.f32.xlu0 %v1478_v5 }
 0x2ea   :  { %v1646_v7 = vmul.f32 0.35355338, %v1642_v6 }
 0x2eb   :  { %v2580_v8 = vpop.f32.mrf.mxu0 }
 0x2ec   :  { %v1647_v9 = vsel %vm551_vm2, %v1646_v7, -inf }
 0x2ed   :  { %1648 = vmax.xlane.f32.xlu1 %v1647_v9  ;;  %v1810_v13 = vpop.f32.mrf.mxu0 }
 0x2ee   :  { %v1814_v14 = vmul.f32 0.35355338, %v1810_v13  ;;  %v631_v17 = vpop.xlane.xlu0 %630 }
 0x2ef   :  { %v2590_v15 = vpop.f32.mrf.mxu0  ;;  %v632_v18 = vsub.f32 %v628_v47, %v631_v17 }
 0x2f0   :  { %v1815_v16 = vsel %vm551_vm2, %v1814_v14, -inf }
 0x2f1   :  { %1816 = vmax.xlane.f32.xlu0 %v1815_v16  ;;  %v633_v19 = vmul.f32 1.442695, %v632_v18 }
 0x2f3   :  { %2653 = vpow2.f32 %v633_v19 }
 0x2fe   :  { %807 = vrot.lane.b32.xlu1 %v3352_v33, %s3108_s23 }
 0x300   :  { %v2654_v20 = vpop.eup %2653 }
 0x301   :  { %v635_v21 = vsel %vm551_vm2, %v2654_v20, 0.0 }
 0x322   :  { %636 = vadd.xlane.f32.xlu1 %v635_v21 }
 0x333   :  { %1143 = vrot.lane.b32.xlu1 %v3352_v33, %s3109_s14 }
 0x362   :  { %v795_v22 = vpop.xlane.xlu1 %794 }
 0x363   :  { %v796_v23 = vsub.f32 %v792_v51, %v795_v22 }
 0x365   :  { %v797_v24 = vmul.f32 1.442695, %v796_v23 }
 0x366   :  { %v964_v25 = vpop.xlane.xlu0 %963 }
 0x367   :  { %2655 = vpow2.f32 %v797_v24  ;;  %v965_v26 = vsub.f32 %v961_v55, %v964_v25 }
 0x369   :  { %v966_v27 = vmul.f32 1.442695, %v965_v26 }
 0x36a   :  { %v1132_v34 = vpop.xlane.xlu0 %1131 }
 0x36b   :  { %2657 = vpow2.f32 %v966_v27  ;;  %v1133_v35 = vsub.f32 %v1129_v59, %v1132_v34  ;;  %v1922_v34 = vld [vmem:[#allocation13 + $0x18] sm:$0xff] }
 0x36c   :  { %2596 = vmatprep.subr.mxu0 %v1922_v34 }
 0x36d   :  { %v1134_v39 = vmul.f32 1.442695, %v1133_v35  ;;  %v1921_v35 = vld [vmem:[#allocation13 + $0x10] sm:$0xff]  ;;  %2597 = vmatpush3.msra.mxu0 %v1922_v34 }
 0x36e   :  { %v1315_v36 = vpop.xlane.xlu1 %1314  ;;  %2598 = vmatprep.subr.mxu0 %v1921_v35 }
 0x36f   :  { %v1316_v38 = vsub.f32 %v1312_v63, %v1315_v36  ;;  %2659 = vpow2.f32 %v1134_v39  ;;  %2599 = vmatpush3.msra.mxu0 %v1921_v35 }
 0x371   :  { %v1317_v43 = vmul.f32 1.442695, %v1316_v38  ;;  %v1919_v38 = vld [vmem:[#allocation13] sm:$0xff] }
 0x372   :  { %v1480_v37 = vpop.xlane.xlu0 %1479 }
 0x373   :  { %v1481_v40 = vsub.f32 %v1477_v3, %v1480_v37  ;;  %2661 = vpow2.f32 %v1317_v43  ;;  %v1920_v37 = vld [vmem:[#allocation13 + $0x8] sm:$0xff] }
 0x374   :  { %v2656_v28 = vpop.eup %2655  ;;  %2600 = vmatprep.subr.mxu0 %v1920_v37 }
 0x375   :  { %v799_v29 = vsel %vm551_vm2, %v2656_v28, 0.0  ;;  %v1482_v45 = vmul.f32 1.442695, %v1481_v40  ;;  %2601 = vmatpush3.msra.mxu0 %v1920_v37  ;;  %v2191_v37 = vld [vmem:[#allocation22 + $0x10] sm:$0xff] }
 0x376   :  { %800 = vadd.xlane.f32.xlu0 %v799_v29  ;;  %v1649_v41 = vpop.xlane.xlu1 %1648  ;;  %2602 = vmatprep.subr.mxu0 %v1919_v38 }
 0x377   :  { %v1650_v44 = vsub.f32 %v1646_v7, %v1649_v41  ;;  %2663 = vpow2.f32 %v1482_v45  ;;  %2603 = vmatpush3.msra.mxu0 %v1919_v38  ;;  %v2190_v38 = vld [vmem:[#allocation22 + $0x8] sm:$0xff] }
 0x378   :  { %v3402_v30 = vpop.eup %2657 }
 0x379   :  { %v968_v32 = vsel %vm551_vm2, %v3402_v30, 0.0  ;;  %v1651_v47 = vmul.f32 1.442695, %v1650_v44 }
 0x37a   :  { %969 = vadd.xlane.f32.xlu1 %v968_v32  ;;  %v1817_v42 = vpop.xlane.xlu0 %1816  ;;  %v808_v49 = vpop.permute.xlu1 %807 }
 0x37b   :  { %v1818_v46 = vsub.f32 %v1814_v14, %v1817_v42  ;;  %2665 = vpow2.f32 %v1651_v47 }
 0x37d   :  { %v1819_v48 = vmul.f32 1.442695, %v1818_v46 }
 0x37f   :  { %2667 = vpow2.f32 %v1819_v48 }
 0x38b   :  { %1492 = vrot.lane.b32.xlu1 %v3350_v31, %s3108_s23 }
 0x38c   :  { %975 = vrot.lane.b32.xlu0 %v3352_v33, %s3107_s22  ;;  %v2660_v33 = vpop.eup %2659 }
 0x38d   :  { %v3410_v50 = vpop.eup %2661  ;;  %v1136_v51 = vsel %vm551_vm2, %v2660_v33, 0.0 }
 0x38e   :  { %v3413_v52 = vpop.eup %2663  ;;  %v1319_v55 = vsel %vm551_vm2, %v3410_v50, 0.0 }
 0x38f   :  { %v3415_v54 = vpop.eup %2665  ;;  %v1484_v56 = vsel %vm551_vm2, %v3413_v52, 0.0 }
 0x390   :  { %v3421_v57 = vpop.eup %2667  ;;  %v1653_v58 = vsel %vm551_vm2, %v3415_v54, 0.0 }
 0x391   :  { %v1821_v59 = vsel %vm551_vm2, %v3421_v57, 0.0 }
 0x3ab   :  { %v637_v53 = vpop.xlane.xlu1 %636  ;;  %1137 = vadd.xlane.f32.xlu0 %v1136_v51 }
 0x3ac   :  { %2669 = vrcp.f32 %v637_v53 }
 0x3af   :  { %1320 = vadd.xlane.f32.xlu1 %v1319_v55  ;;  %1485 = vadd.xlane.f32.xlu0 %v1484_v56  ;;  %v1144_v62 = vpop.permute.xlu1 %1143 }
 0x3b3   :  { %1654 = vadd.xlane.f32.xlu1 %v1653_v58  ;;  %1822 = vadd.xlane.f32.xlu0 %v1821_v59  ;;  %v2011_v59 = vld [vmem:[%s3550_s16] sm:$0x3] }
 0x3b9   :  { %v2670_v60 = vpop.eup %2669 }
 0x3ba   :  { %v639_v61 = vmul.f32 %v2670_v60, %v2654_v20  ;;  %v2406_v60 = vmul.f32 -1.442695, %v2011_v59 }
 0x3bc   :  { %640 = vst.msk [vmem:[#allocation29] sm:$0xff] %vm551_vm2, %v639_v61  ;;  %2524 = vmatmul.mubr.msk.f32.vlgmr.msra.gmra.mxu1 %vm551_vm2, %v639_v61 }
 0x3bd   :  { %2532 = vmatpush3.msra.mxu1 %v808_v49  ;;  %2533 = vmatprep.mubr.msk.f32.mxu1 %vm3106_vm1, %v3105_v12 }
 0x3be   :  { %2541 = vmatprep.subr.mxu1 %v3105_v12 }
 0x3c4   :  { %1828 = vrot.lane.b32.xlu1 %v3350_v31, %s3109_s14 }
 0x3c9   :  { %1660 = vrot.lane.b32.xlu0 %v3350_v31, %s3107_s22 }
 0x3ff   :  { %v801_v63 = vpop.xlane.xlu0 %800 }
 0x400   :  { %2671 = vrcp.f32 %v801_v63  ;;  %v2020_v63 = vld [vmem:[#allocation16 + $0x8] sm:$0xff] }
 0x403   :  { %v970_v0 = vpop.xlane.xlu1 %969  ;;  %v976_v3 = vpop.permute.xlu0 %975 }
 0x404   :  { %2673 = vrcp.f32 %v970_v0 }
 0x407   :  { %v1493_v6 = vpop.permute.xlu1 %1492 }
 0x40d   :  { %v2672_v1 = vpop.eup %2671 }
 0x40e   :  { %v803_v2 = vmul.f32 %v2672_v1, %v2656_v28  ;;  %v2019_v1 = vld [vmem:[#allocation16] sm:$0xff] }
 0x410   :  { %805 = vst.msk [vmem:[#allocation29 + $0x8] sm:$0xff] %vm551_vm2, %v803_v2  ;;  %2534 = vmatmul.mubr.msk.f32.vlgmr.msra.gmra.mxu1 %vm551_vm2, %v803_v2 }
 0x411   :  { %v2674_v4 = vpop.eup %2673  ;;  %2542 = vmatpush3.msra.mxu1 %v976_v3  ;;  %2543 = vmatprep.mubr.msk.f32.mxu1 %vm3106_vm1, %v3105_v12  ;;  %v2403_v3 = vld [vmem:[#allocation14] ss:$0 sm:$0xff] }
 0x412   :  { %2551 = vmatprep.subr.mxu1 %v3105_v12  ;;  %v972_v5 = vmul.f32 %v2674_v4, %v3402_v30 }
 0x414   :  { %974 = vst.msk [vmem:[#allocation29 + $0x10] sm:$0xff] %vm551_vm2, %v972_v5  ;;  %2544 = vmatmul.mubr.msk.f32.vlgmr.msra.gmra.mxu1 %vm551_vm2, %v972_v5 }
 0x415   :  { %2552 = vmatpush3.msra.mxu1 %v1144_v62  ;;  %2553 = vmatprep.mubr.msk.f32.mxu1 %vm3106_vm1, %v3105_v12 }
 0x416   :  { %2561 = vmatprep.subr.mxu1 %v3105_v12 }
 0x434   :  { %v1138_v7 = vpop.xlane.xlu0 %1137 }
 0x435   :  { %2675 = vrcp.f32 %v1138_v7 }
 0x438   :  { %v1321_v8 = vpop.xlane.xlu1 %1320  ;;  %v1486_v9 = vpop.xlane.xlu0 %1485 }
 0x439   :  { %2677 = vrcp.f32 %v1321_v8 }
 0x43a   :  { %2679 = vrcp.f32 %v1486_v9 }
 0x43c   :  { %v1655_v13 = vpop.xlane.xlu1 %1654  ;;  %v1823_v14 = vpop.xlane.xlu0 %1822 }
 0x43d   :  { %2681 = vrcp.f32 %v1655_v13  ;;  %v2147_v13 = vlaneseq }
 0x43e   :  { %2683 = vrcp.f32 %v1823_v14 }
 0x43f   :  { %2685 = vpow2.f32 %v2406_v60  ;;  %v2148_v14 = vshrl.u32 %v2147_v13, 7 }
 0x440   :  { %v1661_v24 = vpop.permute.xlu0 %1660  ;;  %v1829_v25 = vpop.permute.xlu1 %1828 }
 0x442   :  { %v2676_v15 = vpop.eup %2675 }
 0x443   :  { %v1140_v16 = vmul.f32 %v2676_v15, %v2660_v33  ;;  %v2407_v15 = vld [vmem:[#allocation17] ss:$0 sm:$0xff] }
 0x445   :  { %1142 = vst.msk [vmem:[#allocation29 + $0x18] sm:$0xff] %vm551_vm2, %v1140_v16  ;;  %2554 = vmatmul.mubr.msk.f32.vlgmr.msra.gmra.mxu1 %vm551_vm2, %v1140_v16  ;;  %v2163_v16 = vsub.s32 1, %v2148_v14 }
 0x446   :  { %v2678_v17 = vpop.eup %2677  ;;  %2562 = vmatpush3.msra.mxu1 %v3350_v31  ;;  %2563 = vmatprep.mubr.msk.f32.mxu1 %vm3106_vm1, %v3105_v12 }
 0x447   :  { %v2680_v18 = vpop.eup %2679  ;;  %2571 = vmatprep.subr.mxu1 %v3105_v12  ;;  %v1323_v19 = vmul.f32 %v2678_v17, %v3410_v50 }
 0x448   :  { %v1488_v20 = vmul.f32 %v2680_v18, %v3413_v52 }
 0x449   :  { %1325 = vst.msk [vmem:[#allocation29 + $0x20] sm:$0xff] %vm551_vm2, %v1323_v19  ;;  %2564 = vmatmul.mubr.msk.f32.vlgmr.msra.gmra.mxu1 %vm551_vm2, %v1323_v19 }
 0x44a   :  { %v2682_v21 = vpop.eup %2681  ;;  %2572 = vmatpush3.msra.mxu1 %v1493_v6  ;;  %2573 = vmatprep.mubr.msk.f32.mxu1 %vm3106_vm1, %v3105_v12  ;;  %1490 = vst.msk [vmem:[#allocation29 + $0x28] sm:$0xff] %vm551_vm2, %v1488_v20 }
 0x44b   :  { %v2684_v31 = vpop.eup %2683  ;;  %2581 = vmatprep.subr.mxu1 %v3105_v12  ;;  %v1657_v22 = vmul.f32 %v2682_v21, %v3415_v54 }
 0x44c   :  { %v1825_v23 = vmul.f32 %v2684_v31, %v3421_v57  ;;  %v2686_v61 = vpop.eup %2685 }
 0x44d   :  { %2574 = vmatmul.mubr.msk.f32.vlgmr.msra.gmra.mxu1 %vm551_vm2, %v1488_v20  ;;  %1659 = vst.msk [vmem:[#allocation29 + $0x30] sm:$0xff] %vm551_vm2, %v1657_v22  ;;  %v2015_v62 = vadd.f32 1.0, %v2686_v61 }
 0x44e   :  { %2582 = vmatpush3.msra.mxu1 %v1661_v24  ;;  %2583 = vmatprep.mubr.msk.f32.mxu1 %vm3106_vm1, %v3105_v12  ;;  %1827 = vst.msk [vmem:[#allocation29 + $0x38] sm:$0xff] %vm551_vm2, %v1825_v23 }
 0x44f   :  { %2591 = vmatprep.subr.mxu1 %v3105_v12  ;;  %2687 = vrcp.f32 %v2015_v62 }
 0x451   :  { %2584 = vmatmul.mubr.msk.f32.vlgmr.msra.gmra.mxu1 %vm551_vm2, %v1657_v22 }
 0x452   :  { %2592 = vmatpush3.msra.mxu1 %v1829_v25  ;;  %2593 = vmatprep.mubr.msk.f32.mxu1 %vm3106_vm1, %v3105_v12 }
 0x453   :  { %2607 = vmatprep.subr.mxu1 %v3105_v12 }
 0x455   :  { %2594 = vmatmul.mubr.msk.f32.vlgmr.msra.gmra.mxu1 %vm551_vm2, %v1825_v23 }
 0x456   :  { %2611 = vmatprep.mubr.msk.f32.mxu1 %vm3106_vm1, %v3105_v12  ;;  %2608 = vmatpush3.msra.mxu1 %v2020_v63 }
 0x457   :  { %2609 = vmatprep.subr.mxu1 %v3105_v12  ;;  %v2149_v12 = vsub.s32 0, %v2148_v14 }
 0x458   :  { %2610 = vmatpush3.msra.mxu1 %v2019_v1 }
 0x45c   :  { %v2688_v0 = vpop.eup %2687 }
 0x45d   :  { %v2018_v2 = vmul.f32 %v2688_v0, %v2011_v59 }
 0x45f   :  { %2612 = vmatmul.mubr.msk.f32.vlgmr.msra.gmra.mxu1 %vm1232_vm3, %v2018_v2 }
 0x47c   :  { %v710_v26 = vpop.f32.mrf.mxu1 }
 0x47e   :  { %v2525_v27 = vpop.f32.mrf.mxu1 }
 0x4d0   :  { %v879_v28 = vpop.f32.mrf.mxu1 }
 0x4d1   :  { %1220 = vrot.lane.b32.xlu0 %v879_v28, %s3090_s29 }
 0x4d2   :  { %v2535_v29 = vpop.f32.mrf.mxu1 }
 0x4d4   :  { %v1047_v30 = vpop.f32.mrf.mxu1 }
 0x4d5   :  { %1224 = vrot.lane.b32.xlu1 %v1047_v30, %s3110_s13 }
 0x4d6   :  { %v2545_v32 = vpop.f32.mrf.mxu1 }
 0x505   :  { %v1215_v36 = vpop.f32.mrf.mxu1 }
 0x506   :  { %1228 = vrot.lane.b32.xlu1 %v1215_v36, %s3111_s1  ;;  %v2192_v36 = vld [vmem:[#allocation22 + $0x18] sm:$0xff] }
 0x507   :  { %v2555_v39 = vpop.f32.mrf.mxu1  ;;  %2614 = vmatprep.subr.mxu1 %v2192_v36 }
 0x508   :  { %2615 = vmatpush3.msra.mxu1 %v2192_v36  ;;  %v2189_v39 = vld [vmem:[#allocation22] sm:$0xff] }
 0x509   :  { %v1395_v40 = vpop.f32.mrf.mxu1  ;;  %2616 = vmatprep.subr.mxu1 %v2191_v37 }
 0x50a   :  { %2617 = vmatpush3.msra.mxu1 %v2191_v37 }
 0x50b   :  { %v2565_v41 = vpop.f32.mrf.mxu1  ;;  %2618 = vmatprep.subr.mxu1 %v2190_v38 }
 0x50c   :  { %2619 = vmatpush3.msra.mxu1 %v2190_v38 }
 0x50d   :  { %v1564_v42 = vpop.f32.mrf.mxu1  ;;  %2620 = vmatprep.subr.mxu1 %v2189_v39 }
 0x50e   :  { %1905 = vrot.lane.b32.xlu0 %v1564_v42, %s3090_s29  ;;  %2621 = vmatpush3.msra.mxu1 %v2189_v39 }
 0x50f   :  { %v2575_v43 = vpop.f32.mrf.mxu1 }
 0x511   :  { %v1732_v44 = vpop.f32.mrf.mxu1 }
 0x512   :  { %1909 = vrot.lane.b32.xlu0 %v1732_v44, %s3110_s13 }
 0x513   :  { %v2585_v45 = vpop.f32.mrf.mxu1 }
 0x515   :  { %v1900_v46 = vpop.f32.mrf.mxu1 }
 0x516   :  { %1913 = vrot.lane.b32.xlu1 %v1900_v46, %s3111_s1 }
 0x517   :  { %v2595_v47 = vpop.f32.mrf.mxu1 }
 0x518   :  { %v2409_v47 = vld [vmem:[#allocation19] ss:$0 sm:$0xff] }
 0x51f   :  { %v2097_v17 = vpop.f32.mrf.mxu1 }
 0x520   :  { %v2098_v18 = vadd.f32 %v2407_v15, %v2097_v17 }
 0x521   :  { %v2613_v19 = vpop.f32.mrf.mxu1 }
 0x522   :  { %v2155_v20 = vrot.slane %v2098_v18, %v2149_v12  ;;  %v2169_v21 = vrot.slane %v2098_v18, %v2163_v16  ;;  %v2146_v31 = vadd.f32 1.0, %v2098_v18 }
 0x524   :  { %v2150_v22 = vrot.slane %v2146_v31, %v2149_v12  ;;  %v2164_v23 = vrot.slane %v2146_v31, %v2163_v16 }
 0x543   :  { %v1221_v48 = vpop.permute.xlu0 %1220 }
 0x544   :  { %v1231_v49 = vsel %vm551_vm2, %v710_v26, %v1221_v48 }
 0x547   :  { %v1225_v33 = vpop.permute.xlu1 %1224 }
 0x548   :  { %v1233_v50 = vsel %vm1232_vm3, %v1231_v49, %v1225_v33  ;;  %v2410_v33 = vld [vmem:[#allocation20] ss:$0 sm:$0xff] }
 0x578   :  { %v1229_v51 = vpop.permute.xlu1 %1228 }
 0x579   :  { %v1235_v52 = vsel %vm1234_vm4, %v1233_v50, %v1229_v51 }
 0x57a   :  { %2604 = vmatprep.mubr.msk.f32.mxu0 %vm285_vm0, %v1235_v52 }
 0x580   :  { %v1906_v53 = vpop.permute.xlu0 %1905 }
 0x581   :  { %v1916_v55 = vsel %vm551_vm2, %v1395_v40, %v1906_v53 }
 0x584   :  { %v1910_v54 = vpop.permute.xlu0 %1909 }
 0x585   :  { %v1917_v56 = vsel %vm1232_vm3, %v1916_v55, %v1910_v54 }
 0x588   :  { %v1914_v57 = vpop.permute.xlu1 %1913 }
 0x589   :  { %v1918_v58 = vsel %vm1234_vm4, %v1917_v56, %v1914_v57 }
 0x58a   :  { %2605 = vmatmul.mubr.msk.f32.vlgmr.msra.gmra.mxu0 %vm285_vm0, %v1918_v58 }
 0x64a   :  { %v2606_v4 = vpop.f32.mrf.mxu0 }
 0x64b   :  { %v2008_v5 = vadd.f32 %v2606_v4, %v2403_v3 }
 0x64c   :  { %v2002_v6 = vpop.f32.mrf.mxu0 }
 0x64d   :  { %v2003_v7 = vadd.f32 %v2403_v3, %v2002_v6  ;;  %v2106_v8 = vsel %vm285_vm0, %v2008_v5, 0.0 }
 0x64e   :  { %2107 = vadd.xlane.f32.xlu1 %v2106_v8 }
 0x64f   :  { %v2103_v9 = vsel %vm285_vm0, %v2003_v7, 0.0 }
 0x650   :  { %2104 = vadd.xlane.f32.xlu0 %v2103_v9 }
 0x65f   :  { %2157 = vrot.lane.b32.xlu1 %v2155_v20, %s3112_s0 }
 0x6d7   :  { %v2108_v24 = vpop.xlane.xlu1 %2107 }
 0x6d8   :  { %v2111_v25 = vmul.f32 0.03125, %v2108_v24 }
 0x6d9   :  { %v2105_v26 = vpop.xlane.xlu0 %2104 }
 0x6da   :  { %v2110_v27 = vmul.f32 0.03125, %v2105_v26  ;;  %v2113_v28 = vsub.f32 %v2008_v5, %v2111_v25 }
 0x6db   :  { %v2158_v53 = vpop.permute.xlu1 %2157 }
 0x6dc   :  { %v2112_v29 = vsub.f32 %v2003_v7, %v2110_v27  ;;  %v2115_v34 = vmul.f32 %v2113_v28, %v2113_v28  ;;  %v2413_v7 = vld [vmem:[#allocation23] ss:$0 sm:$0xff] }
 0x6de   :  { %v2114_v30 = vmul.f32 %v2112_v29, %v2112_v29  ;;  %v2119_v35 = vsel %vm285_vm0, %v2115_v34, 0.0 }
 0x6e0   :  { %v2116_v32 = vsel %vm285_vm0, %v2114_v30, 0.0 }
 0x6e1   :  { %2117 = vadd.xlane.f32.xlu0 %v2116_v32 }
 0x6e5   :  { %2120 = vadd.xlane.f32.xlu0 %v2119_v35 }
 0x6fb   :  { %2171 = vrot.lane.b32.xlu0 %v2169_v21, %s3112_s0 }
 0x76a   :  { %v2118_v40 = vpop.xlane.xlu0 %2117 }
 0x76b   :  { %v2122_v41 = vmul.f32 0.03125, %v2118_v40 }
 0x76d   :  { %v2124_v42 = vadd.f32 1e-05, %v2122_v41 }
 0x76e   :  { %v2121_v43 = vpop.xlane.xlu0 %2120 }
 0x76f   :  { %2689 = vrsqrt.f32 %v2124_v42  ;;  %v2123_v44 = vmul.f32 0.03125, %v2121_v43 }
 0x771   :  { %v2125_v45 = vadd.f32 1e-05, %v2123_v44 }
 0x772   :  { %v2172_v58 = vpop.permute.xlu0 %2171 }
 0x773   :  { %2691 = vrsqrt.f32 %v2125_v45 }
 0x77c   :  { %v2690_v46 = vpop.eup %2689 }
 0x77d   :  { %v2128_v48 = vmul.f32 %v2690_v46, %v2112_v29 }
 0x77f   :  { %v2136_v49 = vmul.f32 %v2409_v47, %v2128_v48 }
 0x780   :  { %v2692_v50 = vpop.eup %2691 }
 0x781   :  { %v2144_v51 = vadd.f32 %v2410_v33, %v2136_v49  ;;  %v2129_v52 = vmul.f32 %v2692_v50, %v2113_v28 }
 0x783   :  { %v2151_v54 = vmul.f32 %v2150_v22, %v2144_v51  ;;  %v2137_v55 = vmul.f32 %v2409_v47, %v2129_v52 }
 0x785   :  { %v2160_v56 = vadd.f32 %v2158_v53, %v2151_v54  ;;  %v2145_v57 = vadd.f32 %v2410_v33, %v2137_v55 }
 0x787   :  { %v2411_v59 = vmul.f32 -1.442695, %v2160_v56  ;;  %v2165_v60 = vmul.f32 %v2164_v23, %v2145_v57 }
 0x789   :  { %2693 = vpow2.f32 %v2411_v59  ;;  %v2174_v61 = vadd.f32 %v2172_v58, %v2165_v60 }
 0x78b   :  { %v2412_v62 = vmul.f32 -1.442695, %v2174_v61 }
 0x78d   :  { %2695 = vpow2.f32 %v2412_v62 }
 0x796   :  { %v2694_v63 = vpop.eup %2693 }
 0x797   :  { %v2181_v0 = vadd.f32 1.0, %v2694_v63 }
 0x799   :  { %2697 = vrcp.f32 %v2181_v0 }
 0x79a   :  { %v2696_v1 = vpop.eup %2695 }
 0x79b   :  { %v2182_v2 = vadd.f32 1.0, %v2696_v1 }
 0x79d   :  { %2699 = vrcp.f32 %v2182_v2 }
 0x7a6   :  { %v2698_v3 = vpop.eup %2697 }
 0x7a7   :  { %v2187_v4 = vmul.f32 %v2698_v3, %v2160_v56 }
 0x7a9   :  { %2622 = vmatprep.mubr.msk.f32.mxu1 %vm285_vm0, %v2187_v4 }
 0x7aa   :  { %v2700_v5 = vpop.eup %2699 }
 0x7ab   :  { %v2188_v6 = vmul.f32 %v2700_v5, %v2174_v61 }
 0x7ad   :  { %2623 = vmatmul.mubr.msk.f32.vlgmr.msra.gmra.mxu1 %vm285_vm0, %v2188_v6 }
 0x86d   :  { %v2624_v8 = vpop.f32.mrf.mxu1 }
 0x86e   :  { %v2278_v9 = vadd.f32 %v2624_v8, %v2413_v7 }
 0x86f   :  { %v2272_v13 = vpop.f32.mrf.mxu1 }
 0x870   :  { %v2273_v14 = vadd.f32 %v2413_v7, %v2272_v13  ;;  %v2282_v15 = vadd.f32 %v2278_v9, %v3315_v11 }
 0x872   :  { %v2288_v12 = vsel %vm285_vm0, %v2282_v15, 0.0  ;;  %v2281_v16 = vadd.f32 %v2273_v14, %v3310_v10 }
 0x873   :  { %2289 = vadd.xlane.f32.xlu0 %v2288_v12 }
 0x874   :  { %v2285_v17 = vsel %vm285_vm0, %v2281_v16, 0.0 }
 0x875   :  { %2286 = vadd.xlane.f32.xlu1 %v2285_v17 }
 0x8fc   :  { %v2290_v18 = vpop.xlane.xlu0 %2289 }
 0x8fd   :  { %v2292_v19 = vmul.f32 0.03125, %v2290_v18 }
 0x8fe   :  { %v2287_v20 = vpop.xlane.xlu1 %2286 }
 0x8ff   :  { %v2294_v21 = vsub.f32 %v2282_v15, %v2292_v19  ;;  %v2291_v31 = vmul.f32 0.03125, %v2287_v20 }
 0x901   :  { %v2293_v22 = vsub.f32 %v2281_v16, %v2291_v31  ;;  %v2296_v23 = vmul.f32 %v2294_v21, %v2294_v21 }
 0x903   :  { %v2300_v24 = vsel %vm285_vm0, %v2296_v23, 0.0  ;;  %v2295_v25 = vmul.f32 %v2293_v22, %v2293_v22 }
 0x904   :  { %2301 = vadd.xlane.f32.xlu0 %v2300_v24 }
 0x905   :  { %v2297_v11 = vsel %vm285_vm0, %v2295_v25, 0.0 }
 0x906   :  { %2298 = vadd.xlane.f32.xlu1 %v2297_v11 }
 0x907   :  { %3036 = shalt.err (!%p3033_p0)
}
 0x908   :  { %2352 = dma.vmem_to_hbm [thread:$0]  %s2347_s18, 1024, %s3536_s21, [#allocation30], %s3089_s28, %s3089_s28, %s3090_s29   ;;  %v2416_v34 = vld [vmem:[#allocation25] ss:$0 sm:$0xff]  ;;  %v2417_v37 = vld [vmem:[#allocation26] ss:$0 sm:$0xff] }
 0x909   :  { %s3114_s9 = smov [#allocation28]  }
 0x90a   :  { %s2334_s2 = sshll.u32 %s3114_s9, 4  ;;  %s2335_s2 = int_to_ptr.vmem [resolvable:$true] %s2334_s2 }
 0x90b   :  { %s3045_s21 = scalar_lea.vmem %s2335_s2, 256  ;;  %p3050_p2 = scmp.lt.s32.totalorder %s2335_s2, %s2335_s2 }
 0x90c   :  { %p3046_p1 = scmp.ne.s32.totalorder %s2335_s2, %s3045_s21  ;;  %p3051_p3 = scmp.lt.s32.totalorder %s3045_s21, %s3045_s21 }
 0x90e   :  { %p3052_p4 = por %p3051_p3, %p3050_p2 }
 0x910   :  { %p3053_p5 = pnand %p3052_p4, %p3046_p1 }
 0x98d   :  { %v2302_v10 = vpop.xlane.xlu0 %2301 }
 0x98e   :  { %v2304_v26 = vmul.f32 0.03125, %v2302_v10 }
 0x98f   :  { %v2299_v27 = vpop.xlane.xlu1 %2298 }
 0x990   :  { %v2306_v28 = vadd.f32 1e-06, %v2304_v26  ;;  %v2303_v29 = vmul.f32 0.03125, %v2299_v27 }
 0x992   :  { %2701 = vrsqrt.f32 %v2306_v28  ;;  %v2305_v30 = vadd.f32 1e-06, %v2303_v29 }
 0x994   :  { %2703 = vrsqrt.f32 %v2305_v30 }
 0x99f   :  { %v2702_v32 = vpop.eup %2701 }
 0x9a0   :  { %v2310_v35 = vmul.f32 %v2702_v32, %v2294_v21 }
 0x9a1   :  { %v2704_v36 = vpop.eup %2703 }
 0x9a2   :  { %v2309_v38 = vmul.f32 %v2704_v36, %v2293_v22  ;;  %v2318_v39 = vmul.f32 %v2416_v34, %v2310_v35 }
 0x9a4   :  { %v2317_v40 = vmul.f32 %v2416_v34, %v2309_v38  ;;  %v2326_v41 = vadd.f32 %v2417_v37, %v2318_v39 }
 0x9a6   :  { %v2325_v42 = vadd.f32 %v2417_v37, %v2317_v40  ;;  %2328 = vst.msk [vmem:[#allocation28 + $0x8] sm:$0xff] %vm285_vm0, %v2326_v41 }
 0x9a8   :  { %2327 = vst.msk [vmem:[#allocation28] sm:$0xff] %vm285_vm0, %v2325_v42 }
 0x9a9   :  { %3056 = shalt.err (!%p3053_p5)
}
 0x9aa   :  { %2340 = dma.vmem_to_hbm [thread:$0]  %s2335_s2, 256, %s3535_s20, [#allocation4], %s3089_s28, %s3089_s28, %s3090_s29  }
 0x9ab   :  { %3083 = dma.done.wait [#allocation4], 256  }
 0x9ac   :  { %3084 = vsyncadd [#allocation4], 4294967040 }
 0x9ad   :  { %3085 = dma.done.wait [#allocation30], 1024  }
 0x9ae   :  { %3086 = vsyncadd [#allocation30], 4294966272 }
 0x9af   :  { %2359 = vsyncpa [#allocation3], 1 }
 0x9b0   :  { %2360 = vsyncpa [#allocation6], 1 }
 0x9b1   :  { %2361 = vsyncpa [#allocation9], 1 }
 0x9b2   :  { %2362 = vsyncpa [#allocation12], 1 }
 0x9b3   :  { %2363 = vsyncpa [#allocation15], 1 }
 0x9b4   :  { %2364 = vsyncpa [#allocation18], 1 }
 0x9b5   :  { %2365 = vsyncpa [#allocation21], 1 }
 0x9b6   :  { %2366 = vsyncpa [#allocation24], 1 }
 0x9b7   :  { %2367 = vsyncpa [#allocation27], 1 }
 0x9b8   :  { %2368 = vsyncpa [#allocation4], 1 }
 0x9b9   :  { %2369 = vsyncpa [#allocation30], 1 }

</bundles_post_ra>
